<compile_context>
chip_gen: v6e
topology: v6e:2x2x1
jax: 0.10.0
libtpu: 0.0.40
codegen_flags: <defaults>
</compile_context>

<pallas_src>
import math

import jax
import jax.numpy as jnp
from jax.experimental import pallas as pl
from jax.experimental.pallas import tpu as pltpu

N_ATOMS = 16      # atoms per molecule
FEAT = 64         # SchNet feature width (fixed by the module: Linear(64, 64))
N_GAUSS = 128     # RBF expansion width of `distance`
_LN2 = math.log(2.0)


def _ssp(x):
    """Shifted softplus, explicit numerically-stable form (f32)."""
    return jnp.maximum(x, 0.0) + jnp.log(1.0 + jnp.exp(-jnp.abs(x))) - _LN2


def _interaction_kernel(x_ref, dist_ref,
                        w1_ref, b1_ref,        # atomwise_1      (F -> F)
                        wd1_ref, bd1_ref,      # cfconv dense_1  (G -> F)
                        wd2_ref, bd2_ref,      # cfconv dense_2  (F -> F)
                        w2_ref, b2_ref,        # atomwise_2      (F -> F)
                        w3_ref, b3_ref,        # atomwise_3      (F -> F)
                        out_ref):
    x = x_ref[0]                                   # (N, F)    f32
    d = dist_ref[0]                                # (N*N, G)  bf16

    # atomwise_1: h = x @ W1 + b1      (bf16 MXU inputs, f32 accumulation)
    h = jnp.dot(x.astype(jnp.bfloat16), w1_ref[...],
                preferred_element_type=jnp.float32) + b1_ref[...]          # (N, F)

    # Cfconv filter network on the flattened pair dimension: two 2-D MXU matmuls.
    w = jnp.dot(d, wd1_ref[...],
                preferred_element_type=jnp.float32) + bd1_ref[...]         # (N*N, F)
    w = _ssp(w)
    w = jnp.dot(w.astype(jnp.bfloat16), wd2_ref[...],
                preferred_element_type=jnp.float32) + bd2_ref[...]         # (N*N, F)
    w = _ssp(w)

    # Continuous-filter convolution: y_i = sum_j h_j * W_ij.
    # (N*N, F) -> (N, N, F) only regroups whole sublane tiles (16 rows = 2 full
    # (8,128) tiles per atom i), so the view is tile-boundary safe; the reduce
    # over j rides the XLU while MXU/EUP are the busy units.
    w3d = w.reshape(N_ATOMS, N_ATOMS, FEAT)
    y = jnp.sum(h[None, :, :] * w3d, axis=1)                               # (N, F)

    # atomwise_2 -> SSP -> atomwise_3
    y = jnp.dot(y.astype(jnp.bfloat16), w2_ref[...],
                preferred_element_type=jnp.float32) + b2_ref[...]
    y = _ssp(y)
    y = jnp.dot(y.astype(jnp.bfloat16), w3_ref[...],
                preferred_element_type=jnp.float32) + b3_ref[...]

    # Residual add; (1, N, F) block = one contiguous 4 KiB HBM write per molecule.
    out_ref[0] = x + y


def _replicated_spec(shape):
    zeros = (0,) * len(shape)
    return pl.BlockSpec(shape, lambda b, _z=zeros: _z)


def _interaction_batched(x_l, dist_flat_bf16, params_bf16):
    B = x_l.shape[0]
    in_specs = ([pl.BlockSpec((1, N_ATOMS, FEAT), lambda b: (b, 0, 0)),
                 pl.BlockSpec((1, N_ATOMS * N_ATOMS, N_GAUSS), lambda b: (b, 0, 0))]
                + [_replicated_spec(p.shape) for p in params_bf16])
    return pl.pallas_call(
        _interaction_kernel,
        grid=(B,),
        in_specs=in_specs,
        out_specs=pl.BlockSpec((1, N_ATOMS, FEAT), lambda b: (b, 0, 0)),
        out_shape=jax.ShapeDtypeStruct((B, N_ATOMS, FEAT), jnp.float32),
        compiler_params=pltpu.CompilerParams(
            dimension_semantics=("parallel",),
            vmem_limit_bytes=32 * 1024 * 1024,
        ),
    )(x_l, dist_flat_bf16, *params_bf16)


def interaction(x_l, distance, params):
    """SchNet Interaction forward.  Accepts (N,F)/(N,N,G) or batched (B,N,F)/(B,N,N,G)."""
    squeeze = False
    if x_l.ndim == 2:
        x_l, distance = x_l[None], distance[None]
        squeeze = True
    B = x_l.shape[0]
    # Free row-major flatten of the pair dims + bf16 cast (halves the distance DMA).
    dist_flat = distance.reshape(B, N_ATOMS * N_ATOMS, N_GAUSS).astype(jnp.bfloat16)
    (w1, b1, wd1, bd1, wd2, bd2, w2, b2, w3, b3) = params
    bf = lambda w: w.astype(jnp.bfloat16)      # weights -> bf16, biases stay f32
    params_bf16 = (bf(w1), b1, bf(wd1), bd1, bf(wd2), bd2, bf(w2), b2, bf(w3), b3)
    out = _interaction_batched(x_l.astype(jnp.float32), dist_flat, params_bf16)
    return out[0] if squeeze else out


def _init_linear(key, fan_in, fan_out):
    # PyTorch nn.Linear default init: U(-1/sqrt(fan_in), 1/sqrt(fan_in))
    kw, kb = jax.random.split(key)
    bound = 1.0 / math.sqrt(fan_in)
    w = jax.random.uniform(kw, (fan_in, fan_out), jnp.float32, -bound, bound)
    b = jax.random.uniform(kb, (1, fan_out), jnp.float32, -bound, bound)
    return w, b


def _reference(x_l, distance, params):
    # Pure-JAX f32 reference for a single molecule.
    (w1, b1, wd1, bd1, wd2, bd2, w2, b2, w3, b3) = params
    h = x_l @ w1 + b1
    w = jax.nn.softplus(jnp.einsum('ijg,gf->ijf', distance, wd1) + bd1) - _LN2
    w = jax.nn.softplus(jnp.einsum('ijf,fk->ijk', w, wd2) + bd2) - _LN2
    y = jnp.sum(h[None, :, :] * w, axis=1)
    y = jax.nn.softplus(y @ w2 + b2) - _LN2
    y = y @ w3 + b3
    return x_l + y


if __name__ == "__main__":
    key = jax.random.PRNGKey(0)
    keys = jax.random.split(key, 7)

    B = 4  # small batch of molecules to exercise the parallel grid
    x_l = jax.random.normal(keys[0], (B, N_ATOMS, FEAT), jnp.float32)
    # RBF-expanded pairwise distances (non-negative, as a Gaussian expansion would be)
    distance = jax.random.uniform(keys[1], (B, N_ATOMS, N_ATOMS, N_GAUSS),
                                  jnp.float32, 0.0, 1.0)

    w1, b1 = _init_linear(keys[2], FEAT, FEAT)        # atomwise_1
    wd1, bd1 = _init_linear(keys[3], N_GAUSS, FEAT)   # cfconv dense_1
    wd2, bd2 = _init_linear(keys[4], FEAT, FEAT)      # cfconv dense_2
    w2, b2 = _init_linear(keys[5], FEAT, FEAT)        # atomwise_2
    w3, b3 = _init_linear(keys[6], FEAT, FEAT)        # atomwise_3
    params = (w1, b1, wd1, bd1, wd2, bd2, w2, b2, w3, b3)

    out = jax.block_until_ready(interaction(x_l, distance, params))
    ref = jax.block_until_ready(
        jax.vmap(lambda x, d: _reference(x, d, params))(x_l, distance))

    assert out.shape == (B, N_ATOMS, FEAT) and out.dtype == jnp.float32
    assert jnp.allclose(out, ref, rtol=1e-2, atol=1e-2)

    # Module-faithful single-molecule call (adds/removes the batch dim in the wrapper).
    out0 = jax.block_until_ready(interaction(x_l[0], distance[0], params))
    assert out0.shape == (N_ATOMS, FEAT)
    assert jnp.allclose(out0, ref[0], rtol=1e-2, atol=1e-2)

    print("KERNEL_OK")
</pallas_src>

<mosaic_0001>
module attributes {stable_mosaic.version = 11 : i64} {
  func.func @_interaction_kernel(%arg0: i32, %arg1: memref<1x16x64xf32, #tpu.memory_space<vmem>>, %arg2: memref<1x256x128xbf16, #tpu.memory_space<vmem>>, %arg3: memref<64x64xbf16, #tpu.memory_space<vmem>>, %arg4: memref<1x64xf32, #tpu.memory_space<vmem>>, %arg5: memref<128x64xbf16, #tpu.memory_space<vmem>>, %arg6: memref<1x64xf32, #tpu.memory_space<vmem>>, %arg7: memref<64x64xbf16, #tpu.memory_space<vmem>>, %arg8: memref<1x64xf32, #tpu.memory_space<vmem>>, %arg9: memref<64x64xbf16, #tpu.memory_space<vmem>>, %arg10: memref<1x64xf32, #tpu.memory_space<vmem>>, %arg11: memref<64x64xbf16, #tpu.memory_space<vmem>>, %arg12: memref<1x64xf32, #tpu.memory_space<vmem>>, %arg13: memref<1x16x64xf32, #tpu.memory_space<vmem>>) attributes {dimension_semantics = [#tpu.dimension_semantics<parallel>], iteration_bounds = array<i64: 4>, scalar_prefetch = 0 : i64, scratch_operands = 0 : i64, tpu.core_type = #tpu.core_type<tc>, window_params = [{transform_indices = @transform_0, window_bounds = array<i64: 1, 16, 64>}, {transform_indices = @transform_1, window_bounds = array<i64: 1, 256, 128>}, {pipeline_mode = #tpu.pipeline_mode<synchronous>, transform_indices = @transform_2, window_bounds = array<i64: 64, 64>}, {pipeline_mode = #tpu.pipeline_mode<synchronous>, transform_indices = @transform_3, window_bounds = array<i64: 1, 64>}, {pipeline_mode = #tpu.pipeline_mode<synchronous>, transform_indices = @transform_4, window_bounds = array<i64: 128, 64>}, {pipeline_mode = #tpu.pipeline_mode<synchronous>, transform_indices = @transform_5, window_bounds = array<i64: 1, 64>}, {pipeline_mode = #tpu.pipeline_mode<synchronous>, transform_indices = @transform_6, window_bounds = array<i64: 64, 64>}, {pipeline_mode = #tpu.pipeline_mode<synchronous>, transform_indices = @transform_7, window_bounds = array<i64: 1, 64>}, {pipeline_mode = #tpu.pipeline_mode<synchronous>, transform_indices = @transform_8, window_bounds = array<i64: 64, 64>}, {pipeline_mode = #tpu.pipeline_mode<synchronous>, transform_indices = @transform_9, window_bounds = array<i64: 1, 64>}, {pipeline_mode = #tpu.pipeline_mode<synchronous>, transform_indices = @transform_10, window_bounds = array<i64: 64, 64>}, {pipeline_mode = #tpu.pipeline_mode<synchronous>, transform_indices = @transform_11, window_bounds = array<i64: 1, 64>}, {transform_indices = @transform_12, window_bounds = array<i64: 1, 16, 64>}]} {
    %c0 = arith.constant 0 : index
    %c0_0 = arith.constant 0 : index
    %c0_1 = arith.constant 0 : index
    %0 = vector.load %arg1[%c0, %c0_0, %c0_1] : memref<1x16x64xf32, #tpu.memory_space<vmem>>, vector<1x16x64xf32>
    %1 = vector.shape_cast %0 : vector<1x16x64xf32> to vector<16x64xf32>
    %c0_2 = arith.constant 0 : index
    %c0_3 = arith.constant 0 : index
    %c0_4 = arith.constant 0 : index
    %2 = vector.load %arg2[%c0_2, %c0_3, %c0_4] : memref<1x256x128xbf16, #tpu.memory_space<vmem>>, vector<1x256x128xbf16>
    %3 = vector.shape_cast %2 : vector<1x256x128xbf16> to vector<256x128xbf16>
    %4 = arith.truncf %1 : vector<16x64xf32> to vector<16x64xbf16>
    %c0_5 = arith.constant 0 : index
    %c0_6 = arith.constant 0 : index
    %5 = vector.load %arg3[%c0_5, %c0_6] : memref<64x64xbf16, #tpu.memory_space<vmem>>, vector<64x64xbf16>
    %cst = arith.constant dense<0.000000e+00> : vector<16x64xf32>
    %6 = tpu.matmul %4, %5, %cst {dimension_numbers = #tpu.dot_dimension_numbers<[1], [0], [0], [1], [0, 0, 1, 1], [], []>} : vector<16x64xbf16>, vector<64x64xbf16>, vector<16x64xf32> -> vector<16x64xf32>
    %c0_7 = arith.constant 0 : index
    %c0_8 = arith.constant 0 : index
    %7 = vector.load %arg4[%c0_7, %c0_8] : memref<1x64xf32, #tpu.memory_space<vmem>>, vector<1x64xf32>
    %8 = vector.broadcast %7 : vector<1x64xf32> to vector<16x64xf32>
    %9 = arith.addf %6, %8 : vector<16x64xf32>
    %c0_9 = arith.constant 0 : index
    %c0_10 = arith.constant 0 : index
    %10 = vector.load %arg5[%c0_9, %c0_10] : memref<128x64xbf16, #tpu.memory_space<vmem>>, vector<128x64xbf16>
    %cst_11 = arith.constant dense<0.000000e+00> : vector<256x64xf32>
    %11 = tpu.matmul %3, %10, %cst_11 {dimension_numbers = #tpu.dot_dimension_numbers<[1], [0], [0], [1], [0, 0, 1, 1], [], []>} : vector<256x128xbf16>, vector<128x64xbf16>, vector<256x64xf32> -> vector<256x64xf32>
    %c0_12 = arith.constant 0 : index
    %c0_13 = arith.constant 0 : index
    %12 = vector.load %arg6[%c0_12, %c0_13] : memref<1x64xf32, #tpu.memory_space<vmem>>, vector<1x64xf32>
    %13 = vector.broadcast %12 : vector<1x64xf32> to vector<256x64xf32>
    %14 = arith.addf %11, %13 : vector<256x64xf32>
    %cst_14 = arith.constant 0.000000e+00 : f32
    %15 = vector.broadcast %cst_14 : f32 to vector<256x64xf32>
    %16 = arith.maximumf %14, %15 : vector<256x64xf32>
    %17 = math.absf %14 : vector<256x64xf32>
    %cst_15 = arith.constant 0.000000e+00 : f32
    %18 = vector.broadcast %cst_15 : f32 to vector<256x64xf32>
    %19 = arith.subf %18, %17 : vector<256x64xf32>
    %20 = math.exp %19 : vector<256x64xf32>
    %cst_16 = arith.constant 1.000000e+00 : f32
    %21 = vector.broadcast %cst_16 : f32 to vector<256x64xf32>
    %22 = arith.addf %21, %20 : vector<256x64xf32>
    %23 = math.log %22 : vector<256x64xf32>
    %24 = arith.addf %16, %23 : vector<256x64xf32>
    %cst_17 = arith.constant 0.693147182 : f32
    %25 = vector.broadcast %cst_17 : f32 to vector<256x64xf32>
    %26 = arith.subf %24, %25 : vector<256x64xf32>
    %27 = arith.truncf %26 : vector<256x64xf32> to vector<256x64xbf16>
    %c0_18 = arith.constant 0 : index
    %c0_19 = arith.constant 0 : index
    %28 = vector.load %arg7[%c0_18, %c0_19] : memref<64x64xbf16, #tpu.memory_space<vmem>>, vector<64x64xbf16>
    %cst_20 = arith.constant dense<0.000000e+00> : vector<256x64xf32>
    %29 = tpu.matmul %27, %28, %cst_20 {dimension_numbers = #tpu.dot_dimension_numbers<[1], [0], [0], [1], [0, 0, 1, 1], [], []>} : vector<256x64xbf16>, vector<64x64xbf16>, vector<256x64xf32> -> vector<256x64xf32>
    %c0_21 = arith.constant 0 : index
    %c0_22 = arith.constant 0 : index
    %30 = vector.load %arg8[%c0_21, %c0_22] : memref<1x64xf32, #tpu.memory_space<vmem>>, vector<1x64xf32>
    %31 = vector.broadcast %30 : vector<1x64xf32> to vector<256x64xf32>
    %32 = arith.addf %29, %31 : vector<256x64xf32>
    %cst_23 = arith.constant 0.000000e+00 : f32
    %33 = vector.broadcast %cst_23 : f32 to vector<256x64xf32>
    %34 = arith.maximumf %32, %33 : vector<256x64xf32>
    %35 = math.absf %32 : vector<256x64xf32>
    %cst_24 = arith.constant 0.000000e+00 : f32
    %36 = vector.broadcast %cst_24 : f32 to vector<256x64xf32>
    %37 = arith.subf %36, %35 : vector<256x64xf32>
    %38 = math.exp %37 : vector<256x64xf32>
    %cst_25 = arith.constant 1.000000e+00 : f32
    %39 = vector.broadcast %cst_25 : f32 to vector<256x64xf32>
    %40 = arith.addf %39, %38 : vector<256x64xf32>
    %41 = math.log %40 : vector<256x64xf32>
    %42 = arith.addf %34, %41 : vector<256x64xf32>
    %cst_26 = arith.constant 0.693147182 : f32
    %43 = vector.broadcast %cst_26 : f32 to vector<256x64xf32>
    %44 = arith.subf %42, %43 : vector<256x64xf32>
    %45 = vector.shape_cast %44 : vector<256x64xf32> to vector<16x16x64xf32>
    %46 = vector.shape_cast %9 : vector<16x64xf32> to vector<1x16x64xf32>
    %47 = vector.broadcast %46 : vector<1x16x64xf32> to vector<16x16x64xf32>
    %48 = arith.mulf %47, %45 : vector<16x16x64xf32>
    %cst_27 = arith.constant dense<0.000000e+00> : vector<16x64xf32>
    %49 = vector.multi_reduction <add>, %48, %cst_27 [1] : vector<16x16x64xf32> to vector<16x64xf32>
    %50 = arith.truncf %49 : vector<16x64xf32> to vector<16x64xbf16>
    %c0_28 = arith.constant 0 : index
    %c0_29 = arith.constant 0 : index
    %51 = vector.load %arg9[%c0_28, %c0_29] : memref<64x64xbf16, #tpu.memory_space<vmem>>, vector<64x64xbf16>
    %cst_30 = arith.constant dense<0.000000e+00> : vector<16x64xf32>
    %52 = tpu.matmul %50, %51, %cst_30 {dimension_numbers = #tpu.dot_dimension_numbers<[1], [0], [0], [1], [0, 0, 1, 1], [], []>} : vector<16x64xbf16>, vector<64x64xbf16>, vector<16x64xf32> -> vector<16x64xf32>
    %c0_31 = arith.constant 0 : index
    %c0_32 = arith.constant 0 : index
    %53 = vector.load %arg10[%c0_31, %c0_32] : memref<1x64xf32, #tpu.memory_space<vmem>>, vector<1x64xf32>
    %54 = vector.broadcast %53 : vector<1x64xf32> to vector<16x64xf32>
    %55 = arith.addf %52, %54 : vector<16x64xf32>
    %cst_33 = arith.constant 0.000000e+00 : f32
    %56 = vector.broadcast %cst_33 : f32 to vector<16x64xf32>
    %57 = arith.maximumf %55, %56 : vector<16x64xf32>
    %58 = math.absf %55 : vector<16x64xf32>
    %cst_34 = arith.constant 0.000000e+00 : f32
    %59 = vector.broadcast %cst_34 : f32 to vector<16x64xf32>
    %60 = arith.subf %59, %58 : vector<16x64xf32>
    %61 = math.exp %60 : vector<16x64xf32>
    %cst_35 = arith.constant 1.000000e+00 : f32
    %62 = vector.broadcast %cst_35 : f32 to vector<16x64xf32>
    %63 = arith.addf %62, %61 : vector<16x64xf32>
    %64 = math.log %63 : vector<16x64xf32>
    %65 = arith.addf %57, %64 : vector<16x64xf32>
    %cst_36 = arith.constant 0.693147182 : f32
    %66 = vector.broadcast %cst_36 : f32 to vector<16x64xf32>
    %67 = arith.subf %65, %66 : vector<16x64xf32>
    %68 = arith.truncf %67 : vector<16x64xf32> to vector<16x64xbf16>
    %c0_37 = arith.constant 0 : index
    %c0_38 = arith.constant 0 : index
    %69 = vector.load %arg11[%c0_37, %c0_38] : memref<64x64xbf16, #tpu.memory_space<vmem>>, vector<64x64xbf16>
    %cst_39 = arith.constant dense<0.000000e+00> : vector<16x64xf32>
    %70 = tpu.matmul %68, %69, %cst_39 {dimension_numbers = #tpu.dot_dimension_numbers<[1], [0], [0], [1], [0, 0, 1, 1], [], []>} : vector<16x64xbf16>, vector<64x64xbf16>, vector<16x64xf32> -> vector<16x64xf32>
    %c0_40 = arith.constant 0 : index
    %c0_41 = arith.constant 0 : index
    %71 = vector.load %arg12[%c0_40, %c0_41] : memref<1x64xf32, #tpu.memory_space<vmem>>, vector<1x64xf32>
    %72 = vector.broadcast %71 : vector<1x64xf32> to vector<16x64xf32>
    %73 = arith.addf %70, %72 : vector<16x64xf32>
    %74 = arith.addf %1, %73 : vector<16x64xf32>
    %c0_42 = arith.constant 0 : index
    %c0_43 = arith.constant 0 : index
    %c0_44 = arith.constant 0 : index
    %75 = vector.load %arg13[%c0_42, %c0_43, %c0_44] : memref<1x16x64xf32, #tpu.memory_space<vmem>>, vector<1x16x64xf32>
    %76 = vector.shape_cast %75 : vector<1x16x64xf32> to vector<16x64xf32>
    %77 = vector.shape_cast %74 : vector<16x64xf32> to vector<1x16x64xf32>
    tpu.vector_store %arg13[%c0_42, %c0_43, %c0_44], %77 {strides = array<i32>} : memref<1x16x64xf32, #tpu.memory_space<vmem>>, vector<1x16x64xf32>,
    return
  }
  func.func @transform_0(%arg0: i32) -> (i32, i32, i32) {
    %c0_i32 = arith.constant 0 : i32
    %c0_i32_0 = arith.constant 0 : i32
    %c0_i32_1 = arith.constant 0 : i32
    return %arg0, %c0_i32, %c0_i32_0 : i32, i32, i32
  }
  func.func @transform_1(%arg0: i32) -> (i32, i32, i32) {
    %c0_i32 = arith.constant 0 : i32
    %c0_i32_0 = arith.constant 0 : i32
    %c0_i32_1 = arith.constant 0 : i32
    return %arg0, %c0_i32, %c0_i32_0 : i32, i32, i32
  }
  func.func @transform_2(%arg0: i32) -> (i32, i32) {
    %c0_i32 = arith.constant 0 : i32
    %c0_i32_0 = arith.constant 0 : i32
    %c0_i32_1 = arith.constant 0 : i32
    return %c0_i32, %c0_i32_0 : i32, i32
  }
  func.func @transform_3(%arg0: i32) -> (i32, i32) {
    %c0_i32 = arith.constant 0 : i32
    %c0_i32_0 = arith.constant 0 : i32
    %c0_i32_1 = arith.constant 0 : i32
    return %c0_i32, %c0_i32_0 : i32, i32
  }
  func.func @transform_4(%arg0: i32) -> (i32, i32) {
    %c0_i32 = arith.constant 0 : i32
    %c0_i32_0 = arith.constant 0 : i32
    %c0_i32_1 = arith.constant 0 : i32
    return %c0_i32, %c0_i32_0 : i32, i32
  }
  func.func @transform_5(%arg0: i32) -> (i32, i32) {
    %c0_i32 = arith.constant 0 : i32
    %c0_i32_0 = arith.constant 0 : i32
    %c0_i32_1 = arith.constant 0 : i32
    return %c0_i32, %c0_i32_0 : i32, i32
  }
  func.func @transform_6(%arg0: i32) -> (i32, i32) {
    %c0_i32 = arith.constant 0 : i32
    %c0_i32_0 = arith.constant 0 : i32
    %c0_i32_1 = arith.constant 0 : i32
    return %c0_i32, %c0_i32_0 : i32, i32
  }
  func.func @transform_7(%arg0: i32) -> (i32, i32) {
    %c0_i32 = arith.constant 0 : i32
    %c0_i32_0 = arith.constant 0 : i32
    %c0_i32_1 = arith.constant 0 : i32
    return %c0_i32, %c0_i32_0 : i32, i32
  }
  func.func @transform_8(%arg0: i32) -> (i32, i32) {
    %c0_i32 = arith.constant 0 : i32
    %c0_i32_0 = arith.constant 0 : i32
    %c0_i32_1 = arith.constant 0 : i32
    return %c0_i32, %c0_i32_0 : i32, i32
  }
  func.func @transform_9(%arg0: i32) -> (i32, i32) {
    %c0_i32 = arith.constant 0 : i32
    %c0_i32_0 = arith.constant 0 : i32
    %c0_i32_1 = arith.constant 0 : i32
    return %c0_i32, %c0_i32_0 : i32, i32
  }
  func.func @transform_10(%arg0: i32) -> (i32, i32) {
    %c0_i32 = arith.constant 0 : i32
    %c0_i32_0 = arith.constant 0 : i32
    %c0_i32_1 = arith.constant 0 : i32
    return %c0_i32, %c0_i32_0 : i32, i32
  }
  func.func @transform_11(%arg0: i32) -> (i32, i32) {
    %c0_i32 = arith.constant 0 : i32
    %c0_i32_0 = arith.constant 0 : i32
    %c0_i32_1 = arith.constant 0 : i32
    return %c0_i32, %c0_i32_0 : i32, i32
  }
  func.func @transform_12(%arg0: i32) -> (i32, i32, i32) {
    %c0_i32 = arith.constant 0 : i32
    %c0_i32_0 = arith.constant 0 : i32
    %c0_i32_1 = arith.constant 0 : i32
    return %arg0, %c0_i32, %c0_i32_0 : i32, i32, i32
  }
}

</mosaic_0001>

<bundles_post_ra>
// kernel: tpu_custom_call.1
= control target key start
LH: loop header
LB: loop body
LE: loop exit
PB: predicated region body
PF: predicated region fallthrough
CT: control target
= control target key end

     0   :  { %s4238_s0 = inlined_call_operand.vmem [shape: f32[4,16,64], index: 0, kind: input, shape index: {}]   ;;  %s4239_s1 = inlined_call_operand.hbm [shape: bf16[4,256,128], index: 1, kind: input, shape index: {}]   ;;  %s4240_s2 = inlined_call_operand.vmem [shape: bf16[64,64], index: 2, kind: input, shape index: {}]   ;;  %s4241_s3 = inlined_call_operand.vmem [shape: f32[1,64], index: 3, kind: input, shape index: {}]   ;;  %s4242_s4 = inlined_call_operand.vmem [shape: bf16[128,64], index: 4, kind: input, shape index: {}]   ;;  %s4243_s5 = inlined_call_operand.vmem [shape: f32[1,64], index: 5, kind: input, shape index: {}]   ;;  %s4244_s6 = inlined_call_operand.hbm [shape: bf16[64,64], index: 6, kind: input, shape index: {}]   ;;  %s4245_s7 = inlined_call_operand.vmem [shape: f32[1,64], index: 7, kind: input, shape index: {}]   ;;  %s4246_s8 = inlined_call_operand.hbm [shape: bf16[64,64], index: 8, kind: input, shape index: {}]   ;;  %s4247_s9 = inlined_call_operand.vmem [shape: f32[1,64], index: 9, kind: input, shape index: {}]   ;;  %s4248_s10 = inlined_call_operand.hbm [shape: bf16[64,64], index: 10, kind: input, shape index: {}]   ;;  %s4249_s11 = inlined_call_operand.vmem [shape: f32[1,64], index: 11, kind: input, shape index: {}]   ;;  %s4250_s12 = inlined_call_operand.hbm [shape: f32[4,16,64], index: 12, kind: output, shape index: {}]  }
   0x1   :  { %4259 = sst [smem:[#allocation18_spill]] %s4244_s6 }
   0x2   :  { %4260 = sst [smem:[#allocation19_spill]] %s4246_s8 }
   0x3   :  { %4261 = sst [smem:[#allocation20_spill]] %s4248_s10 }
   0x4   :  { %17 = vsyncpa [#allocation3], 0 }
   0x5   :  { %19 = vsyncpa [#allocation3 + $0x1], 0 }
   0x6   :  { %20 = vsyncpa [#allocation6], 0 }
   0x7   :  { %21 = vsyncpa [#allocation9], 0 }
   0x8   :  { %22 = vsyncpa [#allocation4], 0 }
   0x9   :  { %24 = vsyncpa [#allocation4 + $0x1], 0  ;;  %s3396_s21 = smov 0   ;;  %s3398_s22 = smov 0  }
   0xa   :  { %s3400_s23 = smov 0   ;;  %s3402_s24 = smov 0  }
   0xb LB: > { %4262 = sst [smem:[#allocation15_spill]] %s3314_s23  ;;  %s3417_s25 = sadd.s32 4294967295, %s3318_s24   ;;  %s3318_s24 = sphi %s3402_s24, %s4289_s24   ;;  %s3314_s23 = sphi %s3400_s23, %s4286_s23   ;;  %s3310_s22 = sphi %s3398_s22, %s4288_s22   ;;  %s3306_s21 = sphi %s3396_s21, %s4287_s21  }
   0xc   : > { %s2413_s26 = sadd.s32 4294967294, %s3318_s24   ;;  %p76_p0 = scmp.ne.s32.totalorder %s3310_s22, %s3306_s21 }
   0xd   : > { %p4252_p1 = scmp.eq.s32.totalorder %s3417_s25, 0  ;;  %p310_p2 = scmp.eq.s32.totalorder %s3417_s25, 3 }
   0xe   : > { %p316_p3 = scmp.eq.s32.totalorder %s2413_s26, 3  ;;  %p2414_p5 = scmp.ge.s32.totalorder %s3318_s24, 1 }
   0xf   : > { %p3426_p4 = por %p4252_p1, %p76_p0  ;;  %p323_p7 = scmp.lt.s32.totalorder %s3318_s24, 5 }
  0x10   : > { %p3431_p6 = por %p316_p3, %p76_p0  ;;  %s3320_s30 = smov [#allocation5]  }
  0x11   : > { %s4263_s27 = scalar_select %p3426_p4, 1, 0 }
  0x12   : > { %s4264_s28 = scalar_select %p3431_p6, 1, 0 }
  0x13   : > { %p3436_p8 = pnand %p2414_p5, %p323_p7  ;;  %s347_s13 = sshll.u32 %s3320_s30, 4  ;;  %s348_s13 = int_to_ptr.vmem [resolvable:$true] %s347_s13 }
  0x14   : > { %4265 = sst [smem:[#allocation16_spill]] %s4264_s28  ;;  %s3321_s15 = smov [#allocation7]  }
  0x15   : > { %s4266_s29 = scalar_select %p3436_p8, 1, 0 }
  0x16   : > { %p2767_p9 = pneg %p3436_p8  ;;  %s363_s16 = sshll.u32 %s3321_s15, 4  ;;  %s364_s16 = int_to_ptr.vmem [resolvable:$true] %s363_s16 }
  0x17   : > { %s3322_s17 = smov [#allocation8]   ;;  %s3151_s19 = scalar_lea.vmem %s348_s13, 512 }
  0x18   : > { %p3444_p10 = pnand %p2767_p9, %p4252_p1  ;;  %s379_s18 = sshll.u32 %s3322_s17, 4  ;;  %s380_s18 = int_to_ptr.vmem [resolvable:$true] %s379_s18 }
  0x19   : > { %p3152_p12 = scmp.ne.s32.totalorder %s348_s13, %s3151_s19  ;;  %p3159_p3 = scmp.lt.s32.totalorder %s348_s13, %s348_s13 }
  0x1a   : > { %p3142_p11 = pneg %p3444_p10  ;;  %p3160_p5 = scmp.lt.s32.totalorder %s3151_s19, %s3151_s19 }
  0x1c   : > { %p3154_p13 = pnand %p3152_p12, %p3142_p11  ;;  %p3161_p7 = por %p3160_p5, %p3159_p3 }
  0x1e   : > { %p3155_p0 = pneg %p3154_p13 }
  0x20   : > { %p3162_p9 = pnand %p3161_p7, %p3155_p0 }
  0x22   : > { %3165 = shalt.err (!%p3162_p9)
}
  0x23   : > { %s4253_s20 = smov 64   ;;  %s4254_s26 = smov 4  }
  0x24   : > { %s4268_s6 = sld [smem:[#allocation18_spill]]  ;;  %s3177_s17 = scalar_lea.vmem %s364_s16, 512 }
  0x25   : > { %p3178_p12 = scmp.ne.s32.totalorder %s364_s16, %s3177_s17  ;;  %p3185_p0 = scmp.lt.s32.totalorder %s364_s16, %s364_s16 }
  0x26   : > { %p3186_p5 = scmp.lt.s32.totalorder %s3177_s17, %s3177_s17 }
  0x27   : > { %p3180_p13 = pnand %p3178_p12, %p3142_p11 }
  0x28   : > { %p3187_p7 = por %p3186_p5, %p3185_p0 }
  0x29   : > { %p3181_p3 = pneg %p3180_p13 }
  0x2a   : > { %2770 = dma.hbm_to_vmem [thread:$0]  (!%p3444_p10), %s4268_s6, 512, %s348_s13, [#allocation6], %s4253_s20, %s4253_s20, %s4254_s26  }
  0x2b   : > { %p3188_p9 = pnand %p3187_p7, %p3181_p3 }
  0x2d   : > { %3191 = shalt.err (!%p3188_p9)
}
  0x2e   : > { %s4269_s8 = sld [smem:[#allocation19_spill]]  ;;  %s3203_s13 = scalar_lea.vmem %s380_s18, 512 }
  0x2f   : > { %p3204_p1 = scmp.ne.s32.totalorder %s380_s18, %s3203_s13  ;;  %p3211_p0 = scmp.lt.s32.totalorder %s380_s18, %s380_s18 }
  0x30   : > { %p3212_p3 = scmp.lt.s32.totalorder %s3203_s13, %s3203_s13 }
  0x31   : > { %p3206_p12 = pnand %p3204_p1, %p3142_p11 }
  0x32   : > { %p3213_p5 = por %p3212_p3, %p3211_p0 }
  0x33   : > { %p3207_p13 = pneg %p3206_p12 }
  0x34   : > { %2773 = dma.hbm_to_vmem [thread:$0]  (!%p3444_p10), %s4269_s8, 512, %s364_s16, [#allocation6], %s4253_s20, %s4253_s20, %s4254_s26  }
  0x35   : > { %p3214_p7 = pnand %p3213_p5, %p3207_p13 }
  0x37   : > { %3217 = shalt.err (!%p3214_p7)
}
  0x38   : > { %s4270_s10 = sld [smem:[#allocation20_spill]]  ;;  %s3484_s16 = sadd.s32 1, %s3318_s24  }
  0x39   : > { %s60_s14 = ssub.s32 %s3318_s24, %s3484_s16  ;;  %s63_s15 = sadd.s32 1, %s3314_s23 }
  0x3a   : > { %p61_p1 = scmp.eq.s32.totalorder %s60_s14, 0  ;;  %p70_p11 = scmp.ne.s32.totalorder %s3314_s23, %s3310_s22 }
  0x3b   : > { %p71_p9 = scmp.eq.s32.totalorder %s3318_s24, 0  ;;  %p2788_p12 = scmp.lt.s32.totalorder %s3318_s24, 4 }
  0x3c   : > { %s3494_s17 = scalar_select %p61_p1, %s3314_s23, %s63_s15  }
  0x3d   : > { %p72_p13 = por %p71_p9, %p70_p11  ;;  %p3498_p0 = por %p310_p2, %p70_p11 }
  0x3e   : > { %2776 = dma.hbm_to_vmem [thread:$0]  (!%p3444_p10), %s4270_s10, 512, %s380_s18, [#allocation9], %s4253_s20, %s4253_s20, %s4254_s26  }
  0x3f   : > { %4271 = sst [smem:[#allocation17_spill]] %s3494_s17  ;;  %s404_s13 = sand.u32 1, %s3314_s23  }
  0x40   : > { %s4272_s19 = scalar_select %p3498_p0, 1, 0 }
  0x41   : > { %s2565_s28 = sshll.u32 %s3318_s24, 11  ;;  %s2419_s18 = sshll.u32 %s404_s13, 7 }
  0x42   : > { %s3507_s26 = scalar_lea.hbm %s4239_s1, %s2565_s28  ;;  %s408_s14 = scalar_lea.vmem [#allocation2], %s2419_s18 }
  0x43   : > { %s415_s15 = sshll.u32 %s408_s14, 4  ;;  %p3509_p10 = pnand %p2788_p12, %p72_p13  ;;  %s3513_s15 = int_to_ptr.vmem [resolvable:$true] %s415_s15 }
  0x44   : > { %s3515_s8 = scalar_lea.sflag [#allocation3], %s404_s13  ;;  %s3218_s10 = scalar_lea.hbm %s3507_s26, 2048 }
  0x45   : > { %p3219_p2 = scmp.ne.s32.totalorder %s3507_s26, %s3218_s10  ;;  %p3220_p3 = pneg %p3509_p10 }
  0x46   : > { %s3223_s18 = scalar_lea.hbm %s4239_s1, 8192  ;;  %p3224_p1 = scmp.lt.s32.totalorder %s3507_s26, %s4239_s1 }
  0x47   : > { %p3221_p5 = pnand %p3220_p3, %p3219_p2  ;;  %p3225_p11 = scmp.lt.s32.totalorder %s3223_s18, %s3218_s10 }
  0x49   : > { %p3222_p7 = pneg %p3221_p5  ;;  %p3226_p9 = por %p3225_p11, %p3224_p1 }
  0x4b   : > { %p3227_p12 = pnand %p3226_p9, %p3222_p7 }
  0x4d   : > { %3230 = shalt.err (!%p3227_p12)
}
  0x4e   : > { %s3231_s13 = scalar_lea.vmem %s3513_s15, 2048  ;;  %s3325_s17 = smov [#allocation2]  }
  0x4f   : > { %p3232_p13 = scmp.ne.s32.totalorder %s3513_s15, %s3231_s13  ;;  %s3236_s23 = sshll.u32 %s3325_s17, 4  ;;  %s3237_s23 = int_to_ptr.vmem [resolvable:$false] %s3236_s23 }
  0x50   : > { %s3238_s20 = scalar_lea.vmem %s3237_s23, 4096  ;;  %p3239_p5 = scmp.lt.s32.totalorder %s3513_s15, %s3237_s23 }
  0x51   : > { %p3234_p6 = pnand %p3232_p13, %p3220_p3  ;;  %p3240_p0 = scmp.lt.s32.totalorder %s3238_s20, %s3231_s13 }
  0x53   : > { %p3235_p2 = pneg %p3234_p6  ;;  %p3241_p4 = por %p3240_p0, %p3239_p5 }
  0x55   : > { %p3242_p8 = pnand %p3241_p4, %p3235_p2 }
  0x57   : > { %3245 = shalt.err (!%p3242_p8)
}
  0x58   : > { %s4274_s10 = smov 4   ;;  %s4275_s28 = smov 64  }
  0x59   : > { %2780 = dma.hbm_to_vmem [thread:$0]  (!%p3509_p10), %s3507_s26, 2048, %s3513_s15, %s3515_s8, %s4275_s28, %s4275_s28, %s4274_s10  }
  0x5a   : > { %p4276_p6 = scmp.ne.s32.totalorder %s4266_s29, 0 }
  0x5b   : > { %s3542_s17 = sand.u32 (!%p4276_p6), 1, %s3310_s22   ;;  %p4277_p4 = scmp.ne.s32.totalorder (!%p4276_p6), %s4263_s27, 0 }
  0x5c   : > { %427 = sbr.rel (%p4276_p6) target bundleno = 1214 (0x4be), region = 68  ;;  %s2423_s23 = sshll.u32 (!%p4276_p6), %s3542_s17, 7 }
  0x5d   : > { %s430_s18 = scalar_lea.sflag (!%p4276_p6), [#allocation3], %s3542_s17  ;;  %s3546_s30 = scalar_lea.vmem (!%p4276_p6), [#allocation2], %s2423_s23 }
  0x61   : > { %3289 = dma.done.wait (%p4277_p4), %s430_s18, 2048  }
  0x62   : > { %3291 = vsyncadd (%p4277_p4), %s430_s18, 4294965248  ;;  %p4278_p8 = scmp.eq.s32.totalorder %s3417_s25, 0 }
  0x64   : > { %3293 = dma.done.wait (%p4278_p8), [#allocation6], 1024   ;;  %p4279_p0 = pmov %p4278_p8 }
  0x66   : > { %3295 = vsyncadd (%p4279_p0), [#allocation6], 4294966272  ;;  %p4280_p10 = pmov %p4279_p0 }
  0x67   : > { %p4281_p3 = pmov %p4279_p0 }
  0x68   : > { %3297 = dma.done.wait (%p4280_p10), [#allocation9], 512  }
  0x69   : > { %3299 = vsyncadd (%p4281_p3), [#allocation9], 4294966784  ;;  %v2834_v0 = vld [vmem:[%s4242_s4 + $0x38] sm:$0xff]   ;;  %v2835_v1 = vld [vmem:[%s4242_s4 + $0x30] sm:$0xff]   ;;  %v3326_v25 = vmov 0.0   ;;  %p491_p7 = scmp.lt.s32.totalorder %s3417_s25, 3 }
  0x6a   : > { %2639 = vmatprep.subr.bf16.mxu1 %v2834_v0  ;;  %v2836_v2 = vld [vmem:[%s4242_s4 + $0x28] sm:$0xff]   ;;  %v2837_v3 = vld [vmem:[%s4242_s4 + $0x20] sm:$0xff]   ;;  %v2838_v5 = vld [vmem:[%s4242_s4 + $0x18] sm:$0xff]   ;;  %2627 = vmatprep.subr.bf16.mxu0 %v3326_v25  ;;  %vm3327_vm0 = vmmov 0   ;;  %vm571_vm1 = vcmask 523264   ;;  %vm2087_vm2 = vcmask 1041409  }
  0x6b   : > { %2640 = vmatpush3.bf16.msra.mxu1 %v2834_v0  ;;  %v2842_v4 = vld [vmem:[%s3546_s30] sm:$0xff]   ;;  %v2839_v6 = vld [vmem:[%s4242_s4 + $0x10] sm:$0xff]   ;;  %v2840_v7 = vld [vmem:[%s4242_s4 + $0x8] sm:$0xff]   ;;  %s492_s20 = scalar_select %p491_p7, %s3417_s25, 3  ;;  %2635 = vmatprep.mubr.msk.bf16.mxu0 %vm3327_vm0, %v3326_v25  ;;  %vm2089_vm3 = vcmask 1042434   ;;  %vm2091_vm4 = vcmask 1043459  }
  0x6c   : > { %2641 = vmatprep.subr.bf16.mxu1 %v2835_v1  ;;  %2655 = vmatprep.mubr.bf16.mxu1 %v2842_v4  ;;  %v2841_v8 = vld [vmem:[%s4242_s4] sm:$0xff]   ;;  %v2843_v9 = vld [vmem:[%s3546_s30 + $0x8] sm:$0xff]   ;;  %v2844_v10 = vld [vmem:[%s3546_s30 + $0x10] sm:$0xff]   ;;  %vm2093_vm5 = vcmask 1044484   ;;  %vm2095_vm6 = vcmask 1045509   ;;  %vm2097_vm7 = vcmask 1046534  }
  0x6d   : > { %v2845_v11 = vld [vmem:[%s3546_s30 + $0x18] sm:$0xff]   ;;  %v2846_v12 = vld [vmem:[%s3546_s30 + $0x20] sm:$0xff]   ;;  %v2847_v13 = vld [vmem:[%s3546_s30 + $0x28] sm:$0xff]   ;;  %s2566_s23 = sshll.u32 %s492_s20, 4  ;;  %vm2099_vm8 = vcmask 1047559   ;;  %s2567_s18 = sshll.u32 %s3417_s25, 8 }
  0x6e   : > { %v2848_v14 = vld [vmem:[%s3546_s30 + $0x30] sm:$0xff]   ;;  %v2849_v15 = vld [vmem:[%s3546_s30 + $0x38] sm:$0xff]   ;;  %v2850_v16 = vld [vmem:[%s3546_s30 + $0x40] sm:$0xff]   ;;  %s3622_s8 = scalar_lea.vmem %s4238_s0, %s2566_s23  ;;  %s2427_s23 = sshll.u32 %s3542_s17, 4 }
  0x6f   : > { %2642 = vmatpush3.bf16.msra.mxu1 %v2835_v1  ;;  %v2851_v17 = vld [vmem:[%s3546_s30 + $0x48] sm:$0xff]   ;;  %v2852_v18 = vld [vmem:[%s3546_s30 + $0x50] sm:$0xff]   ;;  %v2853_v19 = vld [vmem:[%s3546_s30 + $0x58] sm:$0xff]   ;;  %s490_s6 = scalar_lea.vmem [#allocation10], %s2427_s23  ;;  %s4192_s15 = scalar_lea.hbm %s4250_s12, %s2567_s18 }
  0x70   : > { %2643 = vmatprep.subr.bf16.mxu1 %v2836_v2  ;;  %v2854_v20 = vld [vmem:[%s3546_s30 + $0x60] sm:$0xff]   ;;  %v2855_v21 = vld [vmem:[%s3546_s30 + $0x68] sm:$0xff]   ;;  %v2856_v22 = vld [vmem:[%s3546_s30 + $0x70] sm:$0xff]   ;;  %s2299_s29 = sshll.u32 %s490_s6, 4  ;;  %s2286_s25 = scalar_lea.sflag [#allocation4], %s3542_s17  ;;  %s4194_s29 = int_to_ptr.vmem [resolvable:$true] %s2299_s29 }
  0x71   : > { %v2857_v23 = vld [vmem:[%s3546_s30 + $0x78] sm:$0xff]   ;;  %v2859_v26 = vld [vmem:[%s4240_s2 + $0x10] sm:$0xff]   ;;  %v2860_v27 = vld [vmem:[%s4240_s2 + $0x8] sm:$0xff]   ;;  %s3246_s14 = scalar_lea.vmem %s4194_s29, 256  ;;  %p4282_p11 = scmp.ne.s32.totalorder %s4272_s19, 0 }
  0x72   : > { %v2858_v24 = vld [vmem:[%s4240_s2 + $0x18] sm:$0xff]   ;;  %v2861_v28 = vld [vmem:[%s4240_s2] sm:$0xff]   ;;  %v498_v30 = vld [vmem:[%s3622_s8 + $0x8] sm:$0xff]  ;;  %p3247_p1 = scmp.ne.s32.totalorder %s4194_s29, %s3246_s14  ;;  %s3328_s30 = smov [#allocation10]  }
  0x73   : > { %2644 = vmatpush3.bf16.msra.mxu1 %v2836_v2  ;;  %2628 = vmatpush3.bf16.msra.mxu0 %v2858_v24  ;;  %v497_v29 = vld [vmem:[%s3622_s8] sm:$0xff]  ;;  %v2862_v32 = vld [vmem:[#allocation5 + $0x18] sm:$0xff]   ;;  %v2863_v33 = vld [vmem:[#allocation5 + $0x10] sm:$0xff]   ;;  %s3250_s13 = sshll.u32 %s3328_s30, 4  ;;  %s3251_s13 = int_to_ptr.vmem [resolvable:$false] %s3250_s13 }
  0x74   : > { %2645 = vmatprep.subr.bf16.mxu1 %v2837_v3  ;;  %2629 = vmatprep.subr.bf16.mxu0 %v3326_v25  ;;  %v531_v31 = vpack.c.bf16 %v498_v30, %v497_v29  ;;  %v2864_v34 = vld [vmem:[#allocation5 + $0x8] sm:$0xff]   ;;  %v2865_v35 = vld [vmem:[#allocation5] sm:$0xff]   ;;  %p3248_p9 = pnand %p3247_p1, %p4282_p11  ;;  %s3252_s20 = scalar_lea.vmem %s3251_s13, 512 }
  0x75   : > { %v3635_v36 = vld [vmem:[%s4243_s5] ss:$0 sm:$0xff]  ;;  %p3253_p13 = scmp.lt.s32.totalorder %s4194_s29, %s3251_s13  ;;  %p3254_p2 = scmp.lt.s32.totalorder %s3252_s20, %s3246_s14 }
  0x76   : > { %p3249_p12 = pneg %p3248_p9 }
  0x77   : > { %2646 = vmatpush3.bf16.msra.mxu1 %v2837_v3  ;;  %2630 = vmatpush3.bf16.msra.mxu0 %v2859_v26  ;;  %p3255_p5 = por %p3254_p2, %p3253_p13 }
  0x78   : > { %2647 = vmatprep.subr.bf16.mxu1 %v2838_v5  ;;  %2631 = vmatprep.subr.bf16.mxu0 %v3326_v25 }
  0x79   : > { %p3256_p6 = pnand %p3255_p5, %p3249_p12 }
  0x7b   : > { %2648 = vmatpush3.bf16.msra.mxu1 %v2838_v5  ;;  %2632 = vmatpush3.bf16.msra.mxu0 %v2860_v27 }
  0x7c   : > { %2649 = vmatprep.subr.bf16.mxu1 %v2839_v6  ;;  %2633 = vmatprep.subr.bf16.mxu0 %v3326_v25 }
  0x7f   : > { %2650 = vmatpush3.bf16.msra.mxu1 %v2839_v6  ;;  %2634 = vmatpush3.bf16.msra.mxu0 %v2861_v28 }
  0x80   : > { %2651 = vmatprep.subr.bf16.mxu1 %v2840_v7  ;;  %2687 = vmatprep.subr.bf16.mxu0 %v2862_v32 }
  0x82   : > { %2636 = vmatmul.mubr.msk.bf16.vlgmr.msra.gmra.mxu0 %vm571_vm1, %v531_v31 }
  0x83   : > { %2652 = vmatpush3.bf16.msra.mxu1 %v2840_v7  ;;  %2688 = vmatpush3.bf16.msra.mxu0 %v2862_v32 }
  0x84   : > { %2653 = vmatprep.subr.bf16.mxu1 %v2841_v8  ;;  %2689 = vmatprep.subr.bf16.mxu0 %v2863_v33 }
  0x87   : > { %2654 = vmatpush3.bf16.msra.mxu1 %v2841_v8  ;;  %2690 = vmatpush3.bf16.msra.mxu0 %v2863_v33 }
  0x88   : > { %2739 = vmatprep.subr.bf16.mxu1 %v3326_v25  ;;  %2691 = vmatprep.subr.bf16.mxu0 %v2864_v34 }
  0x8a   : > { %2656 = vmatmul.mubr.bf16.vlgmr.msra.gmra.mxu1 %v2843_v9 }
  0x8b   : > { %2659 = vmatprep.mubr.bf16.mxu1 %v2844_v10  ;;  %2692 = vmatpush3.bf16.msra.mxu0 %v2864_v34 }
  0x8c   : > { %2693 = vmatprep.subr.bf16.mxu0 %v2865_v35 }
  0x8f   : > { %2694 = vmatpush3.bf16.msra.mxu0 %v2865_v35 }
  0x90   : > { %2727 = vmatprep.subr.bf16.mxu0 %v3326_v25 }
  0x92   : > { %2660 = vmatmul.mubr.bf16.gmra.mxu1 %v2845_v11 }
  0x93   : > { %2663 = vmatprep.mubr.bf16.mxu1 %v2846_v12 }
  0x9a   : > { %2664 = vmatmul.mubr.bf16.gmra.mxu1 %v2847_v13 }
  0x9b   : > { %2667 = vmatprep.mubr.bf16.mxu1 %v2848_v14 }
  0xa2   : > { %2668 = vmatmul.mubr.bf16.gmra.mxu1 %v2849_v15 }
  0xa3   : > { %2671 = vmatprep.mubr.bf16.mxu1 %v2850_v16 }
  0xaa   : > { %2672 = vmatmul.mubr.bf16.gmra.mxu1 %v2851_v17 }
  0xab   : > { %2675 = vmatprep.mubr.bf16.mxu1 %v2852_v18 }
  0xb2   : > { %2676 = vmatmul.mubr.bf16.gmra.mxu1 %v2853_v19 }
  0xb3   : > { %2679 = vmatprep.mubr.bf16.mxu1 %v2854_v20 }
  0xba   : > { %2680 = vmatmul.mubr.bf16.gmra.mxu1 %v2855_v21 }
  0xbb   : > { %2683 = vmatprep.mubr.bf16.mxu1 %v2856_v22 }
  0xc2   : > { %2684 = vmatmul.mubr.bf16.gmra.mxu1 %v2857_v23 }
  0xc3   : > { %2747 = vmatprep.mubr.msk.bf16.mxu1 %vm3327_vm0, %v3326_v25 }
 0x14a   : > { %v2657_v37 = vpop.f32.mrf.mxu1 }
 0x14b   : > { %v3638_v38 = vadd.f32 %v2657_v37, %v3635_v36 }
 0x14c   : > { %v817_v39 = vpop.f32.mrf.mxu1 }
 0x14d   : > { %v978_v40 = vand.u32 2147483647, %v3638_v38  ;;  %v3642_v41 = vadd.f32 %v3635_v36, %v817_v39 }
 0x14e   : > { %v2658_v42 = vpop.f32.mrf.mxu1 }
 0x14f   : > { %v1010_v43 = vsub.f32 0.0, %v978_v40  ;;  %v976_v44 = vand.u32 2147483647, %v3642_v41  ;;  %v3646_v45 = vadd.f32 %v2658_v42, %v3635_v36 }
 0x150   : > { %v820_v46 = vpop.f32.mrf.mxu1 }
 0x151   : > { %v1044_v47 = vmul.f32 1.442695, %v1010_v43  ;;  %v1008_v48 = vsub.f32 0.0, %v976_v44  ;;  %v979_v49 = vand.u32 2147483647, %v3646_v45  ;;  %v3650_v50 = vadd.f32 %v3635_v36, %v820_v46 }
 0x152   : > { %v2661_v51 = vpop.f32.mrf.mxu1 }
 0x153   : > { %2874 = vpow2.f32 %v1044_v47  ;;  %v1040_v52 = vmul.f32 1.442695, %v1008_v48  ;;  %v1011_v53 = vsub.f32 0.0, %v979_v49  ;;  %v3653_v54 = vadd.f32 %v2661_v51, %v3635_v36 }
 0x154   : > { %v977_v55 = vand.u32 2147483647, %v3650_v50  ;;  %v833_v56 = vpop.f32.mrf.mxu1  ;;  %v946_v49 = vmax.f32 %v3638_v38, 0.0  ;;  %v944_v38 = vmax.f32 %v3642_v41, 0.0 }
 0x155   : > { %2876 = vpow2.f32 %v1040_v52  ;;  %v1046_v57 = vmul.f32 1.442695, %v1011_v53  ;;  %v982_v58 = vand.u32 2147483647, %v3653_v54  ;;  %v3658_v60 = vadd.f32 %v3635_v36, %v833_v56 }
 0x156   : > { %v1009_v59 = vsub.f32 0.0, %v977_v55  ;;  %v2662_v61 = vpop.f32.mrf.mxu1 }
 0x157   : > { %2878 = vpow2.f32 %v1046_v57  ;;  %v1014_v62 = vsub.f32 0.0, %v982_v58  ;;  %v3661_v63 = vadd.f32 %v2662_v61, %v3635_v36  ;;  %v980_v1 = vand.u32 2147483647, %v3658_v60 }
 0x158   : > { %v1042_v0 = vmul.f32 1.442695, %v1009_v59  ;;  %v836_v2 = vpop.f32.mrf.mxu1 }
 0x159   : > { %v1052_v3 = vmul.f32 1.442695, %v1014_v62  ;;  %v983_v4 = vand.u32 2147483647, %v3661_v63  ;;  %v3666_v5 = vadd.f32 %v3635_v36, %v836_v2  ;;  %v1012_v6 = vsub.f32 0.0, %v980_v1 }
 0x15a   : > { %2880 = vpow2.f32 %v1042_v0  ;;  %v2665_v7 = vpop.f32.mrf.mxu1  ;;  %v947_v1 = vmax.f32 %v3646_v45, 0.0 }
 0x15b   : > { %2882 = vpow2.f32 %v1052_v3  ;;  %v1015_v8 = vsub.f32 0.0, %v983_v4  ;;  %v981_v9 = vand.u32 2147483647, %v3666_v5  ;;  %v1048_v10 = vmul.f32 1.442695, %v1012_v6 }
 0x15c   : > { %v3670_v11 = vadd.f32 %v2665_v7, %v3635_v36  ;;  %v849_v12 = vpop.f32.mrf.mxu1  ;;  %v945_v6 = vmax.f32 %v3650_v50, 0.0 }
 0x15d   : > { %v1054_v13 = vmul.f32 1.442695, %v1015_v8  ;;  %v1013_v14 = vsub.f32 0.0, %v981_v9  ;;  %v3673_v15 = vadd.f32 %v3635_v36, %v849_v12  ;;  %2884 = vpow2.f32 %v1048_v10 }
 0x15e   : > { %v986_v16 = vand.u32 2147483647, %v3670_v11  ;;  %v2666_v17 = vpop.f32.mrf.mxu1 }
 0x15f   : > { %2886 = vpow2.f32 %v1054_v13  ;;  %v1050_v18 = vmul.f32 1.442695, %v1013_v14  ;;  %v984_v19 = vand.u32 2147483647, %v3673_v15  ;;  %v3678_v22 = vadd.f32 %v2666_v17, %v3635_v36 }
 0x160   : > { %v2875_v20 = vpop.eup %2874  ;;  %v1018_v21 = vsub.f32 0.0, %v986_v16  ;;  %v852_v23 = vpop.f32.mrf.mxu1 }
 0x161   : > { %v1106_v24 = vadd.f32 1.0, %v2875_v20  ;;  %2888 = vpow2.f32 %v1050_v18  ;;  %v1016_v26 = vsub.f32 0.0, %v984_v19  ;;  %v3681_v27 = vadd.f32 %v3635_v36, %v852_v23 }
 0x162   : > { %v2877_v28 = vpop.eup %2876  ;;  %v1060_v29 = vmul.f32 1.442695, %v1018_v21  ;;  %v987_v30 = vand.u32 2147483647, %v3678_v22  ;;  %v2669_v31 = vpop.f32.mrf.mxu1  ;;  %v950_v20 = vmax.f32 %v3653_v54, 0.0 }
 0x163   : > { %2890 = vlog2.f32 %v1106_v24  ;;  %v1104_v32 = vadd.f32 1.0, %v2877_v28  ;;  %v1056_v33 = vmul.f32 1.442695, %v1016_v26  ;;  %v985_v37 = vand.u32 2147483647, %v3681_v27 }
 0x164   : > { %v2879_v34 = vpop.eup %2878  ;;  %2892 = vpow2.f32 %v1060_v29  ;;  %v1019_v35 = vsub.f32 0.0, %v987_v30  ;;  %v3686_v39 = vadd.f32 %v2669_v31, %v3635_v36  ;;  %v865_v40 = vpop.f32.mrf.mxu1  ;;  %v948_v26 = vmax.f32 %v3658_v60, 0.0 }
 0x165   : > { %2894 = vlog2.f32 %v1104_v32  ;;  %v1107_v42 = vadd.f32 1.0, %v2879_v34  ;;  %v3689_v43 = vadd.f32 %v3635_v36, %v865_v40  ;;  %v1017_v46 = vsub.f32 0.0, %v985_v37 }
 0x166   : > { %2896 = vpow2.f32 %v1056_v33  ;;  %v1062_v44 = vmul.f32 1.442695, %v1019_v35  ;;  %v2670_v47 = vpop.f32.mrf.mxu1  ;;  %v990_v51 = vand.u32 2147483647, %v3686_v39  ;;  %v951_v31 = vmax.f32 %v3661_v63, 0.0 }
 0x167   : > { %v2881_v48 = vpop.eup %2880  ;;  %2898 = vlog2.f32 %v1107_v42  ;;  %v988_v52 = vand.u32 2147483647, %v3689_v43  ;;  %v1058_v56 = vmul.f32 1.442695, %v1017_v46  ;;  %v3695_v57 = vadd.f32 %v2670_v47, %v3635_v36 }
 0x168   : > { %v2883_v53 = vpop.eup %2882  ;;  %v1105_v55 = vadd.f32 1.0, %v2881_v48  ;;  %2900 = vpow2.f32 %v1062_v44  ;;  %v868_v58 = vpop.f32.mrf.mxu1  ;;  %v1022_v61 = vsub.f32 0.0, %v990_v51 }
 0x169   : > { %v1110_v59 = vadd.f32 1.0, %v2883_v53  ;;  %v1020_v62 = vsub.f32 0.0, %v988_v52  ;;  %v3698_v0 = vadd.f32 %v3635_v36, %v868_v58  ;;  %v991_v2 = vand.u32 2147483647, %v3695_v57 }
 0x16a   : > { %2902 = vlog2.f32 %v1105_v55  ;;  %v2673_v3 = vpop.f32.mrf.mxu1  ;;  %v2885_v4 = vpop.eup %2884  ;;  %v1068_v7 = vmul.f32 1.442695, %v1022_v61 }
 0x16b   : > { %2904 = vlog2.f32 %v1110_v59  ;;  %v1064_v8 = vmul.f32 1.442695, %v1020_v62  ;;  %v1108_v10 = vadd.f32 1.0, %v2885_v4  ;;  %v1023_v12 = vsub.f32 0.0, %v991_v2 }
 0x16c   : > { %v2887_v9 = vpop.eup %2886  ;;  %2906 = vpow2.f32 %v1058_v56  ;;  %v989_v13 = vand.u32 2147483647, %v3698_v0  ;;  %v881_v14 = vpop.f32.mrf.mxu1  ;;  %v3706_v17 = vadd.f32 %v2673_v3, %v3635_v36  ;;  %v949_v59 = vmax.f32 %v3666_v5, 0.0 }
 0x16d   : > { %v1111_v16 = vadd.f32 1.0, %v2887_v9  ;;  %2908 = vpow2.f32 %v1068_v7  ;;  %v3709_v18 = vadd.f32 %v3635_v36, %v881_v14  ;;  %v1070_v21 = vmul.f32 1.442695, %v1023_v12 }
 0x16e   : > { %v2889_v19 = vpop.eup %2888  ;;  %2910 = vlog2.f32 %v1108_v10  ;;  %v1021_v23 = vsub.f32 0.0, %v989_v13  ;;  %v2674_v24 = vpop.f32.mrf.mxu1  ;;  %v994_v29 = vand.u32 2147483647, %v3706_v17  ;;  %v954_v7 = vmax.f32 %v3670_v11, 0.0 }
 0x16f   : > { %2912 = vlog2.f32 %v1111_v16  ;;  %v1109_v28 = vadd.f32 1.0, %v2889_v19  ;;  %v992_v33 = vand.u32 2147483647, %v3709_v18  ;;  %v3717_v42 = vadd.f32 %v2674_v24, %v3635_v36 }
 0x170   : > { %v2891_v30 = vpop.eup %2890  ;;  %2914 = vpow2.f32 %v1064_v8  ;;  %v1066_v32 = vmul.f32 1.442695, %v1021_v23  ;;  %v884_v34 = vpop.f32.mrf.mxu1  ;;  %v1026_v40 = vsub.f32 0.0, %v994_v29  ;;  %v952_v8 = vmax.f32 %v3673_v15, 0.0 }
 0x171   : > { %v2893_v35 = vpop.eup %2892  ;;  %v1141_v37 = vmul.f32 0.6931472, %v2891_v30  ;;  %2916 = vlog2.f32 %v1109_v28  ;;  %v1024_v47 = vsub.f32 0.0, %v992_v33  ;;  %v3720_v48 = vadd.f32 %v3635_v36, %v884_v34 }
 0x172   : > { %v2895_v44 = vpop.eup %2894  ;;  %v1114_v46 = vadd.f32 1.0, %v2893_v35  ;;  %2918 = vpow2.f32 %v1070_v21  ;;  %v2677_v51 = vpop.f32.mrf.mxu1  ;;  %v1076_v56 = vmul.f32 1.442695, %v1026_v40  ;;  %v995_v10 = vand.u32 2147483647, %v3717_v42 }
 0x173   : > { %v2897_v52 = vpop.eup %2896  ;;  %v1202_v53 = vadd.f32 %v1141_v37, %v946_v49  ;;  %v1137_v55 = vmul.f32 0.6931472, %v2895_v44  ;;  %2920 = vpow2.f32 %v1066_v32  ;;  %v1072_v62 = vmul.f32 1.442695, %v1024_v47 }
 0x174   : > { %v2899_v58 = vpop.eup %2898  ;;  %2922 = vlog2.f32 %v1114_v46  ;;  %v1112_v61 = vadd.f32 1.0, %v2897_v52  ;;  %v897_v2 = vpop.f32.mrf.mxu1  ;;  %v993_v19 = vand.u32 2147483647, %v3720_v48  ;;  %v1027_v24 = vsub.f32 0.0, %v995_v10 }
 0x175   : > { %v2901_v3 = vpop.eup %2900  ;;  %v1143_v4 = vmul.f32 0.6931472, %v2899_v58  ;;  %2924 = vpow2.f32 %v1076_v56  ;;  %v1200_v49 = vadd.f32 %v1137_v55, %v944_v38  ;;  %v2463_v14 = vadd.f32 -0.6931472, %v1202_v53 }
 0x176   : > { %2926 = vlog2.f32 %v1112_v61  ;;  %v1115_v9 = vadd.f32 1.0, %v2901_v3  ;;  %v3728_v12 = vpop.f32.mrf.mxu1  ;;  %v3734_v41 = vadd.f32 %v2677_v51, %v3635_v36  ;;  %v955_v32 = vmax.f32 %v3678_v22, 0.0 }
 0x177   : > { %v2903_v13 = vpop.eup %2902  ;;  %v1203_v16 = vadd.f32 %v1143_v4, %v947_v1  ;;  %2928 = vpow2.f32 %v1072_v62  ;;  %v1025_v33 = vsub.f32 0.0, %v993_v19  ;;  %v2461_v1 = vadd.f32 -0.6931472, %v1200_v49 }
 0x178   : > { %v2905_v21 = vpop.eup %2904  ;;  %v1139_v23 = vmul.f32 0.6931472, %v2903_v13  ;;  %2930 = vlog2.f32 %v1115_v9  ;;  %v3736_v38 = vpop.f32.mrf.mxu1  ;;  %v1078_v37 = vmul.f32 1.442695, %v1027_v24  ;;  %v3746_v52 = vadd.f32 %v3635_v36, %v897_v2 }
 0x179   : > { %v2907_v28 = vpop.eup %2906  ;;  %v2464_v29 = vadd.f32 -0.6931472, %v1203_v16  ;;  %v1149_v30 = vmul.f32 0.6931472, %v2905_v21  ;;  %v1074_v51 = vmul.f32 1.442695, %v1025_v33 }
 0x17a   : > { %v2909_v45 = vpop.eup %2908  ;;  %v1201_v34 = vadd.f32 %v1139_v23, %v945_v6  ;;  %v1113_v35 = vadd.f32 1.0, %v2907_v28  ;;  %v3741_v40 = vpop.f32.mrf.mxu1  ;;  %v998_v50 = vand.u32 2147483647, %v3734_v41  ;;  %v953_v62 = vmax.f32 %v3681_v27, 0.0 }
 0x17b   : > { %v2911_v44 = vpop.eup %2910  ;;  %v1206_v46 = vadd.f32 %v1149_v30, %v950_v20  ;;  %v1118_v47 = vadd.f32 1.0, %v2909_v45  ;;  %v1265_v58 = vpack.c.bf16 %v2464_v29, %v2463_v14  ;;  %v996_v21 = vand.u32 2147483647, %v3746_v52 }
 0x17c   : > { %v2913_v53 = vpop.eup %2912  ;;  %v2462_v55 = vadd.f32 -0.6931472, %v1201_v34  ;;  %v1145_v56 = vmul.f32 0.6931472, %v2911_v44  ;;  %2932 = vlog2.f32 %v1113_v35  ;;  %v3752_v2 = vpop.f32.mrf.mxu1  ;;  %v1030_v13 = vsub.f32 0.0, %v998_v50 }
 0x17d   : > { %v2915_v6 = vpop.eup %2914  ;;  %v1151_v61 = vmul.f32 0.6931472, %v2913_v53  ;;  %2934 = vlog2.f32 %v1118_v47  ;;  %v2467_v16 = vadd.f32 -0.6931472, %v1206_v46  ;;  %v1028_v30 = vsub.f32 0.0, %v996_v21 }
 0x17e   : > { %v2917_v3 = vpop.eup %2916  ;;  %v1264_v54 = vpack.c.bf16 %v2462_v55, %v2461_v1  ;;  %v1204_v20 = vadd.f32 %v1145_v56, %v948_v26  ;;  %v1116_v4 = vadd.f32 1.0, %v2915_v6  ;;  %2936 = vpow2.f32 %v1078_v37  ;;  %v2682_v33 = vpop.f32.mrf.mxu1 }
 0x17f   : > { %v2919_v49 = vpop.eup %2918  ;;  %v1207_v9 = vadd.f32 %v1151_v61, %v951_v31  ;;  %v1147_v10 = vmul.f32 0.6931472, %v2917_v3  ;;  %2938 = vpow2.f32 %v1074_v51  ;;  %v1084_v28 = vmul.f32 1.442695, %v1030_v13 }
 0x180   : > { %v2921_v14 = vpop.eup %2920  ;;  %2940 = vlog2.f32 %v1116_v4  ;;  %v1119_v19 = vadd.f32 1.0, %v2919_v49  ;;  %2695 = vmatprep.mubr.msk.bf16.mxu0 %vm571_vm1, %v1264_v54  ;;  %v2465_v26 = vadd.f32 -0.6931472, %v1204_v20  ;;  %v3763_v35 = vadd.f32 %v3728_v12, %v3635_v36  ;;  %v916_v12 = vpop.f32.mrf.mxu1 }
 0x181   : > { %v2923_v60 = vpop.eup %2922  ;;  %v1205_v23 = vadd.f32 %v1147_v10, %v949_v59  ;;  %v1117_v24 = vadd.f32 1.0, %v2921_v14  ;;  %2696 = vmatmul.mubr.msk.bf16.vlgmr.msra.gmra.mxu0 %vm571_vm1, %v1265_v58  ;;  %v2468_v31 = vadd.f32 -0.6931472, %v1207_v9  ;;  %v1080_v44 = vmul.f32 1.442695, %v1028_v30 }
 0x182   : > { %v2925_v63 = vpop.eup %2924  ;;  %v1157_v29 = vmul.f32 0.6931472, %v2923_v60  ;;  %2942 = vlog2.f32 %v1119_v19  ;;  %v958_v51 = vmax.f32 %v3686_v39, 0.0  ;;  %v999_v11 = vand.u32 2147483647, %v3763_v35  ;;  %v3788_v22 = vpop.f32.mrf.mxu1 }
 0x183   : > { %v2927_v45 = vpop.eup %2926  ;;  %v2466_v1 = vadd.f32 -0.6931472, %v1205_v23  ;;  %2944 = vlog2.f32 %v1117_v24  ;;  %v1122_v34 = vadd.f32 1.0, %v2925_v63  ;;  %v1267_v55 = vpack.c.bf16 %v2468_v31, %v2467_v16 }
 0x184   : > { %v2929_v5 = vpop.eup %2928  ;;  %v1210_v59 = vadd.f32 %v1157_v29, %v954_v7  ;;  %v1153_v37 = vmul.f32 0.6931472, %v2927_v45  ;;  %2946 = vpow2.f32 %v1084_v28  ;;  %v3773_v7 = vadd.f32 %v3635_v36, %v3736_v38  ;;  %v929_v31 = vpop.f32.mrf.mxu1 }
 0x185   : > { %v2931_v46 = vpop.eup %2930  ;;  %v1266_v47 = vpack.c.bf16 %v2466_v1, %v2465_v26  ;;  %2948 = vlog2.f32 %v1122_v34  ;;  %v1120_v53 = vadd.f32 1.0, %v2929_v5  ;;  %v3777_v6 = vadd.f32 %v3741_v40, %v3635_v36 }
 0x186   : > { %v1208_v56 = vadd.f32 %v1153_v37, %v952_v8  ;;  %v1159_v50 = vmul.f32 0.6931472, %v2931_v46  ;;  %2950 = vpow2.f32 %v1080_v44  ;;  %v2471_v39 = vadd.f32 -0.6931472, %v1210_v59 }
 0x187   : > { %2952 = vlog2.f32 %v1120_v53  ;;  %2699 = vmatprep.mubr.msk.bf16.mxu0 %vm571_vm1, %v1266_v47  ;;  %v956_v8 = vmax.f32 %v3689_v43, 0.0  ;;  %v959_v58 = vmax.f32 %v3695_v57, 0.0  ;;  %v957_v54 = vmax.f32 %v3698_v0, 0.0 }
 0x188   : > { %v1211_v15 = vadd.f32 %v1159_v50, %v955_v32  ;;  %v2469_v3 = vadd.f32 -0.6931472, %v1208_v56  ;;  %v1031_v38 = vsub.f32 0.0, %v999_v11  ;;  %v997_v20 = vand.u32 2147483647, %v3773_v7 }
 0x189   : > { %v2933_v61 = vpop.eup %2932  ;;  %2700 = vmatmul.mubr.msk.bf16.gmra.mxu0 %vm571_vm1, %v1267_v55  ;;  %v1002_v9 = vand.u32 2147483647, %v3777_v6  ;;  %v3792_v13 = vadd.f32 %v3635_v36, %v3752_v2  ;;  %v3797_v21 = vadd.f32 %v2682_v33, %v3635_v36  ;;  %v3800_v24 = vadd.f32 %v3635_v36, %v916_v12  ;;  %v2686_v55 = vpop.f32.mrf.mxu1 }
 0x18a   : > { %v2935_v40 = vpop.eup %2934  ;;  %v2472_v4 = vadd.f32 -0.6931472, %v1211_v15  ;;  %v1155_v49 = vmul.f32 0.6931472, %v2933_v61  ;;  %v1086_v10 = vmul.f32 1.442695, %v1031_v38 }
 0x18b   : > { %v2937_v32 = vpop.eup %2936  ;;  %v1165_v43 = vmul.f32 0.6931472, %v2935_v40  ;;  %v1029_v57 = vsub.f32 0.0, %v997_v20  ;;  %v1034_v19 = vsub.f32 0.0, %v1002_v9  ;;  %v1000_v30 = vand.u32 2147483647, %v3792_v13 }
 0x18c   : > { %v2939_v0 = vpop.eup %2938  ;;  %v1209_v14 = vadd.f32 %v1155_v49, %v953_v62  ;;  %v1123_v16 = vadd.f32 1.0, %v2937_v32  ;;  %2954 = vpow2.f32 %v1086_v10  ;;  %v1269_v27 = vpack.c.bf16 %v2472_v4, %v2471_v39 }
 0x18d   : > { %v2941_v60 = vpop.eup %2940  ;;  %v1121_v26 = vadd.f32 1.0, %v2939_v0  ;;  %v1082_v23 = vmul.f32 1.442695, %v1029_v57  ;;  %v1092_v2 = vmul.f32 1.442695, %v1034_v19  ;;  %v1214_v62 = vadd.f32 %v1165_v43, %v958_v51 }
 0x18e   : > { %v2470_v28 = vadd.f32 -0.6931472, %v1209_v14  ;;  %v1161_v63 = vmul.f32 0.6931472, %v2941_v60  ;;  %2956 = vlog2.f32 %v1123_v16  ;;  %v1032_v37 = vsub.f32 0.0, %v1000_v30 }
 0x18f   : > { %v2943_v29 = vpop.eup %2942  ;;  %2958 = vlog2.f32 %v1121_v26  ;;  %v1003_v44 = vand.u32 2147483647, %v3797_v21  ;;  %v962_v53 = vmax.f32 %v3706_v17, 0.0  ;;  %v2475_v15 = vadd.f32 -0.6931472, %v1214_v62 }
 0x190   : > { %v2945_v33 = vpop.eup %2944  ;;  %v1268_v45 = vpack.c.bf16 %v2470_v28, %v2469_v3  ;;  %v1212_v1 = vadd.f32 %v1161_v63, %v956_v8  ;;  %v1167_v34 = vmul.f32 0.6931472, %v2943_v29  ;;  %2960 = vpow2.f32 %v1082_v23 }
 0x191   : > { %v2947_v5 = vpop.eup %2946  ;;  %v1163_v59 = vmul.f32 0.6931472, %v2945_v33  ;;  %2962 = vpow2.f32 %v1092_v2  ;;  %v1088_v12 = vmul.f32 1.442695, %v1032_v37  ;;  %v1035_v11 = vsub.f32 0.0, %v1003_v44 }
 0x192   : > { %v2949_v46 = vpop.eup %2948  ;;  %v1215_v47 = vadd.f32 %v1167_v34, %v959_v58  ;;  %2703 = vmatprep.mubr.msk.bf16.mxu0 %vm571_vm1, %v1268_v45  ;;  %v1126_v50 = vadd.f32 1.0, %v2947_v5  ;;  %v2473_v8 = vadd.f32 -0.6931472, %v1212_v1  ;;  %v1001_v61 = vand.u32 2147483647, %v3800_v24 }
 0x193   : > { %v2951_v51 = vpop.eup %2950  ;;  %v1213_v56 = vadd.f32 %v1163_v59, %v957_v54  ;;  %2704 = vmatmul.mubr.msk.bf16.gmra.mxu0 %vm571_vm1, %v1269_v27  ;;  %2964 = vpow2.f32 %v1088_v12  ;;  %v1173_v17 = vmul.f32 0.6931472, %v2949_v46  ;;  %v960_v20 = vmax.f32 %v3709_v18, 0.0  ;;  %v932_v54 = vpop.f32.mrf.mxu1 }
 0x194   : > { %v2953_v39 = vpop.eup %2952  ;;  %v2476_v3 = vadd.f32 -0.6931472, %v1215_v47  ;;  %v1124_v58 = vadd.f32 1.0, %v2951_v51  ;;  %v1094_v40 = vmul.f32 1.442695, %v1035_v11  ;;  %v1033_v4 = vsub.f32 0.0, %v1001_v61 }
 0x195   : > { %v2474_v38 = vadd.f32 -0.6931472, %v1213_v56  ;;  %v1169_v9 = vmul.f32 0.6931472, %v2953_v39  ;;  %2966 = vlog2.f32 %v1126_v50  ;;  %v3811_v32 = vadd.f32 %v3788_v22, %v3635_v36 }
 0x196   : > { %2968 = vpow2.f32 %v1094_v40  ;;  %v1090_v43 = vmul.f32 1.442695, %v1033_v4  ;;  %v3814_v10 = vadd.f32 %v3635_v36, %v929_v31  ;;  %v3817_v57 = vadd.f32 %v2686_v55, %v3635_v36 }
 0x197   : > { %v1270_v49 = vpack.c.bf16 %v2474_v38, %v2473_v8  ;;  %v1271_v0 = vpack.c.bf16 %v2476_v3, %v2475_v15  ;;  %2970 = vlog2.f32 %v1124_v58  ;;  %v1006_v18 = vand.u32 2147483647, %v3811_v32 }
 0x198   : > { %v3821_v14 = vadd.f32 %v3635_v36, %v932_v54  ;;  %v963_v22 = vmax.f32 %v3717_v42, 0.0  ;;  %v961_v19 = vmax.f32 %v3720_v48, 0.0  ;;  %2972 = vpow2.f32 %v1090_v43 }
 0x199   : > { %2707 = vmatprep.mubr.msk.bf16.mxu0 %vm571_vm1, %v1270_v49  ;;  %v2955_v16 = vpop.eup %2954  ;;  %v1004_v60 = vand.u32 2147483647, %v3814_v10  ;;  %v1218_v23 = vadd.f32 %v1173_v17, %v962_v53  ;;  %v1038_v63 = vsub.f32 0.0, %v1006_v18  ;;  %v1007_v2 = vand.u32 2147483647, %v3817_v57 }
 0x19a   : > { %v1127_v28 = vadd.f32 1.0, %v2955_v16  ;;  %v1216_v31 = vadd.f32 %v1169_v9, %v960_v20  ;;  %v1005_v62 = vand.u32 2147483647, %v3821_v14  ;;  %v967_v4 = vmax.f32 %v3763_v35, 0.0 }
 0x19b   : > { %v2957_v26 = vpop.eup %2956  ;;  %2708 = vmatmul.mubr.msk.bf16.gmra.mxu0 %vm571_vm1, %v1271_v0  ;;  %v1036_v27 = vsub.f32 0.0, %v1004_v60  ;;  %v1100_v48 = vmul.f32 1.442695, %v1038_v63  ;;  %v1039_v33 = vsub.f32 0.0, %v1007_v2  ;;  %v2479_v50 = vadd.f32 -0.6931472, %v1218_v23  ;;  %v3836_v23 = vpop.f32.mrf.mxu0 }
 0x19c   : > { %v2959_v36 = vpop.eup %2958  ;;  %v1175_v29 = vmul.f32 0.6931472, %v2957_v26  ;;  %2974 = vlog2.f32 %v1127_v28  ;;  %v1037_v59 = vsub.f32 0.0, %v1005_v62  ;;  %v2477_v55 = vadd.f32 -0.6931472, %v1216_v31 }
 0x19d   : > { %v2961_v42 = vpop.eup %2960  ;;  %v1171_v30 = vmul.f32 0.6931472, %v2959_v36  ;;  %v1096_v5 = vmul.f32 1.442695, %v1036_v27  ;;  %2976 = vpow2.f32 %v1100_v48  ;;  %v1102_v46 = vmul.f32 1.442695, %v1039_v33  ;;  %v2637_v31 = vpop.f32.mrf.mxu0 }
 0x19e   : > { %v2963_v45 = vpop.eup %2962  ;;  %v1219_v1 = vadd.f32 %v1175_v29, %v963_v22  ;;  %v1125_v34 = vadd.f32 1.0, %v2961_v42  ;;  %v1098_v53 = vmul.f32 1.442695, %v1037_v59  ;;  %v964_v9 = vmax.f32 %v3746_v52, 0.0 }
 0x19f   : > { %v1217_v37 = vadd.f32 %v1171_v30, %v961_v19  ;;  %v1130_v44 = vadd.f32 1.0, %v2963_v45  ;;  %v966_v0 = vmax.f32 %v3734_v41, 0.0  ;;  %v965_v60 = vmax.f32 %v3773_v7, 0.0  ;;  %v3838_v48 = vpop.f32.mrf.mxu0 }
 0x1a0   : > { %v2480_v47 = vadd.f32 -0.6931472, %v1219_v1  ;;  %2978 = vlog2.f32 %v1125_v34  ;;  %v2965_v56 = vpop.eup %2964 }
 0x1a1   : > { %v2478_v51 = vadd.f32 -0.6931472, %v1217_v37  ;;  %2980 = vlog2.f32 %v1130_v44  ;;  %v1128_v11 = vadd.f32 1.0, %v2965_v56  ;;  %v2638_v1 = vpop.f32.mrf.mxu0  ;;  %v968_v37 = vmax.f32 %v3792_v13, 0.0 }
 0x1a2   : > { %2982 = vpow2.f32 %v1096_v5  ;;  %v2967_v39 = vpop.eup %2966  ;;  %v1273_v15 = vpack.c.bf16 %v2480_v47, %v2479_v50  ;;  %v971_v44 = vmax.f32 %v3797_v21, 0.0  ;;  %v969_v56 = vmax.f32 %v3800_v24, 0.0 }
 0x1a3   : > { %v1272_v12 = vpack.c.bf16 %v2478_v51, %v2477_v55  ;;  %2984 = vpow2.f32 %v1102_v46  ;;  %v2969_v8 = vpop.eup %2968  ;;  %v1181_v40 = vmul.f32 0.6931472, %v2967_v39  ;;  %v974_v24 = vmax.f32 %v3811_v32, 0.0  ;;  %v3859_v32 = vld [vmem:[%s4245_s7] ss:$0 sm:$0xff] }
 0x1a4   : > { %2986 = vpow2.f32 %v1098_v53  ;;  %v2971_v61 = vpop.eup %2970  ;;  %v1131_v3 = vadd.f32 1.0, %v2969_v8  ;;  %v970_v53 = vmax.f32 %v3777_v6, 0.0  ;;  %v972_v6 = vmax.f32 %v3814_v10, 0.0 }
 0x1a5   : > { %2988 = vlog2.f32 %v1128_v11  ;;  %2711 = vmatprep.mubr.msk.bf16.mxu0 %vm571_vm1, %v1272_v12  ;;  %v2973_v38 = vpop.eup %2972  ;;  %v1177_v20 = vmul.f32 0.6931472, %v2971_v61  ;;  %v1222_v63 = vadd.f32 %v1181_v40, %v966_v0 }
 0x1a6   : > { %2712 = vmatmul.mubr.msk.bf16.gmra.mxu0 %vm571_vm1, %v1273_v15  ;;  %2990 = vlog2.f32 %v1131_v3  ;;  %v1129_v58 = vadd.f32 1.0, %v2973_v38 }
 0x1a7   : > { %v1220_v19 = vadd.f32 %v1177_v20, %v964_v9  ;;  %v2483_v7 = vadd.f32 -0.6931472, %v1222_v63  ;;  %v973_v9 = vmax.f32 %v3821_v14, 0.0 }
 0x1a8   : > { %2992 = vlog2.f32 %v1129_v58 }
 0x1a9   : > { %v2975_v17 = vpop.eup %2974  ;;  %v2481_v62 = vadd.f32 -0.6931472, %v1220_v19 }
 0x1aa   : > { %v1183_v54 = vmul.f32 0.6931472, %v2975_v17  ;;  %v2977_v49 = vpop.eup %2976 }
 0x1ab   : > { %v1134_v16 = vadd.f32 1.0, %v2977_v49 }
 0x1ac   : > { %v1223_v18 = vadd.f32 %v1183_v54, %v967_v4  ;;  %v975_v4 = vmax.f32 %v3817_v57, 0.0 }
 0x1ad   : > { %v2979_v43 = vpop.eup %2978  ;;  %2994 = vlog2.f32 %v1134_v16 }
 0x1ae   : > { %v2981_v22 = vpop.eup %2980  ;;  %v1179_v26 = vmul.f32 0.6931472, %v2979_v43  ;;  %v2484_v29 = vadd.f32 -0.6931472, %v1223_v18 }
 0x1af   : > { %v2983_v28 = vpop.eup %2982  ;;  %v1189_v59 = vmul.f32 0.6931472, %v2981_v22 }
 0x1b0   : > { %v2985_v35 = vpop.eup %2984  ;;  %v1221_v2 = vadd.f32 %v1179_v26, %v965_v60  ;;  %v1132_v36 = vadd.f32 1.0, %v2983_v28  ;;  %v1275_v5 = vpack.c.bf16 %v2484_v29, %v2483_v7 }
 0x1b1   : > { %v2987_v52 = vpop.eup %2986  ;;  %v1135_v27 = vadd.f32 1.0, %v2985_v35  ;;  %v1226_v12 = vadd.f32 %v1189_v59, %v970_v53 }
 0x1b2   : > { %v2989_v41 = vpop.eup %2988  ;;  %v2482_v42 = vadd.f32 -0.6931472, %v1221_v2  ;;  %2996 = vlog2.f32 %v1132_v36  ;;  %v1133_v30 = vadd.f32 1.0, %v2987_v52 }
 0x1b3   : > { %2998 = vlog2.f32 %v1135_v27  ;;  %v1185_v45 = vmul.f32 0.6931472, %v2989_v41  ;;  %v2991_v34 = vpop.eup %2990  ;;  %v2487_v21 = vadd.f32 -0.6931472, %v1226_v12 }
 0x1b4   : > { %v1274_v33 = vpack.c.bf16 %v2482_v42, %v2481_v62  ;;  %3000 = vlog2.f32 %v1133_v30  ;;  %v1191_v46 = vmul.f32 0.6931472, %v2991_v34 }
 0x1b5   : > { %v2993_v47 = vpop.eup %2992  ;;  %v1224_v55 = vadd.f32 %v1185_v45, %v968_v37 }
 0x1b6   : > { %2715 = vmatprep.mubr.msk.bf16.mxu0 %vm571_vm1, %v1274_v33  ;;  %v1227_v51 = vadd.f32 %v1191_v46, %v971_v44  ;;  %v1187_v50 = vmul.f32 0.6931472, %v2993_v47 }
 0x1b7   : > { %2716 = vmatmul.mubr.msk.bf16.gmra.mxu0 %vm571_vm1, %v1275_v5  ;;  %v2485_v13 = vadd.f32 -0.6931472, %v1224_v55 }
 0x1b8   : > { %v1225_v11 = vadd.f32 %v1187_v50, %v969_v56  ;;  %v2488_v39 = vadd.f32 -0.6931472, %v1227_v51 }
 0x1ba   : > { %v2995_v15 = vpop.eup %2994  ;;  %v2486_v8 = vadd.f32 -0.6931472, %v1225_v11  ;;  %v1277_v38 = vpack.c.bf16 %v2488_v39, %v2487_v21 }
 0x1bb   : > { %v1197_v58 = vmul.f32 0.6931472, %v2995_v15 }
 0x1bc   : > { %v1276_v61 = vpack.c.bf16 %v2486_v8, %v2485_v13 }
 0x1bd   : > { %v1230_v0 = vadd.f32 %v1197_v58, %v974_v24 }
 0x1be   : > { %2719 = vmatprep.mubr.msk.bf16.mxu0 %vm571_vm1, %v1276_v61 }
 0x1bf   : > { %v2997_v3 = vpop.eup %2996  ;;  %2720 = vmatmul.mubr.msk.bf16.gmra.mxu0 %vm571_vm1, %v1277_v38  ;;  %v2491_v60 = vadd.f32 -0.6931472, %v1230_v0 }
 0x1c0   : > { %v2999_v17 = vpop.eup %2998  ;;  %v1193_v20 = vmul.f32 0.6931472, %v2997_v3 }
 0x1c1   : > { %v3001_v40 = vpop.eup %3000  ;;  %v1199_v54 = vmul.f32 0.6931472, %v2999_v17 }
 0x1c2   : > { %v1228_v49 = vadd.f32 %v1193_v20, %v972_v6  ;;  %v1195_v43 = vmul.f32 0.6931472, %v3001_v40 }
 0x1c3   : > { %v1231_v18 = vadd.f32 %v1199_v54, %v975_v4  ;;  %v2430_v54 = vld [vmem:[%s4241_s3] ss:$0 sm:$0xff] }
 0x1c4   : > { %v1229_v16 = vadd.f32 %v1195_v43, %v973_v9  ;;  %v2489_v10 = vadd.f32 -0.6931472, %v1228_v49 }
 0x1c5   : > { %v2492_v22 = vadd.f32 -0.6931472, %v1231_v18 }
 0x1c6   : > { %v2490_v19 = vadd.f32 -0.6931472, %v1229_v16 }
 0x1c7   : > { %v1279_v28 = vpack.c.bf16 %v2492_v22, %v2491_v60  ;;  %v3908_v60 = vadd.f32 %v2430_v54, %v3836_v23 }
 0x1c8   : > { %v1278_v26 = vpack.c.bf16 %v2490_v19, %v2489_v10 }
 0x1ca   : > { %2723 = vmatprep.mubr.msk.bf16.mxu0 %vm571_vm1, %v1278_v26 }
 0x1cb   : > { %2724 = vmatmul.mubr.msk.bf16.gmra.mxu0 %vm571_vm1, %v1279_v28 }
 0x1cc   : > { %2735 = vmatprep.mubr.msk.bf16.mxu0 %vm3327_vm0, %v3326_v25 }
 0x241   : > { %v2697_v57 = vpop.f32.mrf.mxu0 }
 0x242   : > { %v3862_v14 = vadd.f32 %v2697_v57, %v3859_v32 }
 0x243   : > { %v1401_v63 = vpop.f32.mrf.mxu0 }
 0x244   : > { %v1562_v35 = vand.u32 2147483647, %v3862_v14  ;;  %v3866_v2 = vadd.f32 %v3859_v32, %v1401_v63 }
 0x245   : > { %v2698_v36 = vpop.f32.mrf.mxu0 }
 0x246   : > { %v1594_v31 = vsub.f32 0.0, %v1562_v35  ;;  %v1560_v52 = vand.u32 2147483647, %v3866_v2  ;;  %v3870_v29 = vadd.f32 %v2698_v36, %v3859_v32  ;;  %v3915_v35 = vadd.f32 %v2430_v54, %v3838_v48 }
 0x247   : > { %v1404_v27 = vpop.f32.mrf.mxu0 }
 0x248   : > { %v1628_v41 = vmul.f32 1.442695, %v1594_v31  ;;  %v1592_v62 = vsub.f32 0.0, %v1560_v52  ;;  %v1563_v42 = vand.u32 2147483647, %v3870_v29  ;;  %v3874_v30 = vadd.f32 %v3859_v32, %v1404_v27 }
 0x249   : > { %v2701_v7 = vpop.f32.mrf.mxu0  ;;  %v1530_v52 = vmax.f32 %v3862_v14, 0.0 }
 0x24a   : > { %3002 = vpow2.f32 %v1628_v41  ;;  %v1624_v33 = vmul.f32 1.442695, %v1592_v62  ;;  %v1595_v45 = vsub.f32 0.0, %v1563_v42  ;;  %v3877_v1 = vadd.f32 %v2701_v7, %v3859_v32 }
 0x24b   : > { %v1561_v34 = vand.u32 2147483647, %v3874_v30  ;;  %v1417_v5 = vpop.f32.mrf.mxu0  ;;  %v1528_v42 = vmax.f32 %v3866_v2, 0.0 }
 0x24c   : > { %3004 = vpow2.f32 %v1624_v33  ;;  %v1630_v59 = vmul.f32 1.442695, %v1595_v45  ;;  %v1566_v37 = vand.u32 2147483647, %v3877_v1  ;;  %v3882_v46 = vadd.f32 %v3859_v32, %v1417_v5 }
 0x24d   : > { %v1593_v44 = vsub.f32 0.0, %v1561_v34  ;;  %v2702_v47 = vpop.f32.mrf.mxu0 }
 0x24e   : > { %3006 = vpow2.f32 %v1630_v59  ;;  %v1598_v53 = vsub.f32 0.0, %v1566_v37  ;;  %v3885_v55 = vadd.f32 %v2702_v47, %v3859_v32  ;;  %v1564_v56 = vand.u32 2147483647, %v3882_v46 }
 0x24f   : > { %v1626_v51 = vmul.f32 1.442695, %v1593_v44  ;;  %v1420_v50 = vpop.f32.mrf.mxu0 }
 0x250   : > { %v1636_v12 = vmul.f32 1.442695, %v1598_v53  ;;  %v1567_v11 = vand.u32 2147483647, %v3885_v55  ;;  %v3890_v39 = vadd.f32 %v3859_v32, %v1420_v50  ;;  %v1596_v15 = vsub.f32 0.0, %v1564_v56 }
 0x251   : > { %3008 = vpow2.f32 %v1626_v51  ;;  %v1531_v51 = vmax.f32 %v3870_v29, 0.0  ;;  %v1529_v56 = vmax.f32 %v3874_v30, 0.0  ;;  %v2869_v29 = vld [vmem:[#allocation7] sm:$0xff]  }
 0x252   : > { %3010 = vpow2.f32 %v1636_v12  ;;  %v1599_v13 = vsub.f32 0.0, %v1567_v11  ;;  %v1565_v8 = vand.u32 2147483647, %v3890_v39  ;;  %v1632_v21 = vmul.f32 1.442695, %v1596_v15 }
 0x253   : > { %v2705_v61 = vpop.f32.mrf.mxu0  ;;  %v1534_v15 = vmax.f32 %v3877_v1, 0.0 }
 0x254   : > { %v1638_v3 = vmul.f32 1.442695, %v1599_v13  ;;  %v1597_v38 = vsub.f32 0.0, %v1565_v8  ;;  %v3894_v58 = vadd.f32 %v2705_v61, %v3859_v32  ;;  %3012 = vpow2.f32 %v1632_v21 }
 0x255   : > { %v1433_v17 = vpop.f32.mrf.mxu0 }
 0x256   : > { %3014 = vpow2.f32 %v1638_v3  ;;  %v1634_v6 = vmul.f32 1.442695, %v1597_v38  ;;  %v1570_v20 = vand.u32 2147483647, %v3894_v58  ;;  %v3898_v24 = vadd.f32 %v3859_v32, %v1433_v17 }
 0x257   : > { %v3003_v40 = vpop.eup %3002  ;;  %v2706_v4 = vpop.f32.mrf.mxu0  ;;  %v1532_v17 = vmax.f32 %v3882_v46, 0.0 }
 0x258   : > { %v1690_v49 = vadd.f32 1.0, %v3003_v40  ;;  %3016 = vpow2.f32 %v1634_v6  ;;  %v1602_v9 = vsub.f32 0.0, %v1570_v20  ;;  %v3904_v43 = vadd.f32 %v2706_v4, %v3859_v32 }
 0x259   : > { %v3005_v0 = vpop.eup %3004  ;;  %v1568_v18 = vand.u32 2147483647, %v3898_v24  ;;  %v1436_v16 = vpop.f32.mrf.mxu0  ;;  %v1535_v4 = vmax.f32 %v3885_v55, 0.0 }
 0x25a   : > { %3018 = vlog2.f32 %v1690_v49  ;;  %v1688_v22 = vadd.f32 1.0, %v3005_v0  ;;  %v1644_v10 = vmul.f32 1.442695, %v1602_v9  ;;  %v1571_v28 = vand.u32 2147483647, %v3904_v43 }
 0x25b   : > { %v3007_v19 = vpop.eup %3006  ;;  %v1600_v26 = vsub.f32 0.0, %v1568_v18  ;;  %v3912_v57 = vadd.f32 %v3859_v32, %v1436_v16  ;;  %v2709_v63 = vpop.f32.mrf.mxu0  ;;  %v1533_v9 = vmax.f32 %v3890_v39, 0.0 }
 0x25c   : > { %3020 = vlog2.f32 %v1688_v22  ;;  %v1691_v36 = vadd.f32 1.0, %v3007_v19  ;;  %v3918_v31 = vadd.f32 %v2709_v63, %v3859_v32  ;;  %v1603_v27 = vsub.f32 0.0, %v1571_v28  ;;  %v2866_v22 = vld [vmem:[#allocation7 + $0x18] sm:$0xff]  }
 0x25d   : > { %3022 = vpow2.f32 %v1644_v10  ;;  %v1640_v23 = vmul.f32 1.442695, %v1600_v26  ;;  %v1449_v41 = vpop.f32.mrf.mxu0  ;;  %v1569_v7 = vand.u32 2147483647, %v3912_v57  ;;  %v1538_v19 = vmax.f32 %v3894_v58, 0.0  ;;  %2728 = vmatpush3.bf16.msra.mxu0 %v2866_v22 }
 0x25e   : > { %v3009_v62 = vpop.eup %3008  ;;  %3024 = vlog2.f32 %v1691_v36  ;;  %v1574_v48 = vand.u32 2147483647, %v3918_v31  ;;  %v1646_v34 = vmul.f32 1.442695, %v1603_v27  ;;  %v3925_v5 = vadd.f32 %v3859_v32, %v1449_v41  ;;  %2729 = vmatprep.subr.bf16.mxu0 %v3326_v25 }
 0x25f   : > { %v3011_v33 = vpop.eup %3010  ;;  %v1689_v45 = vadd.f32 1.0, %v3009_v62  ;;  %3026 = vpow2.f32 %v1640_v23  ;;  %v2710_v59 = vpop.f32.mrf.mxu0  ;;  %v1601_v44 = vsub.f32 0.0, %v1569_v7  ;;  %v1536_v36 = vmax.f32 %v3898_v24, 0.0 }
 0x260   : > { %v1694_v37 = vadd.f32 1.0, %v3011_v33  ;;  %v1606_v47 = vsub.f32 0.0, %v1574_v48  ;;  %v3928_v53 = vadd.f32 %v2710_v59, %v3859_v32  ;;  %v1572_v50 = vand.u32 2147483647, %v3925_v5 }
 0x261   : > { %3028 = vlog2.f32 %v1689_v45  ;;  %v1452_v12 = vpop.f32.mrf.mxu0  ;;  %v3013_v11 = vpop.eup %3012  ;;  %v1642_v13 = vmul.f32 1.442695, %v1601_v44  ;;  %v1539_v62 = vmax.f32 %v3904_v43, 0.0  ;;  %v1542_v2 = vmax.f32 %v3918_v31, 0.0 }
 0x262   : > { %3030 = vlog2.f32 %v1694_v37  ;;  %v1652_v8 = vmul.f32 1.442695, %v1606_v47  ;;  %v1692_v61 = vadd.f32 1.0, %v3013_v11  ;;  %v1604_v3 = vsub.f32 0.0, %v1572_v50  ;;  %v2867_v37 = vld [vmem:[#allocation7 + $0x10] sm:$0xff]  }
 0x263   : > { %v3015_v21 = vpop.eup %3014  ;;  %3032 = vpow2.f32 %v1646_v34  ;;  %v1575_v38 = vand.u32 2147483647, %v3928_v53  ;;  %v3937_v20 = vadd.f32 %v3859_v32, %v1452_v12  ;;  %v1537_v50 = vmax.f32 %v3912_v57, 0.0  ;;  %2730 = vmatpush3.bf16.msra.mxu0 %v2867_v37 }
 0x264   : > { %v1695_v6 = vadd.f32 1.0, %v3015_v21  ;;  %3034 = vpow2.f32 %v1642_v13  ;;  %v1648_v54 = vmul.f32 1.442695, %v1604_v3  ;;  %2731 = vmatprep.subr.bf16.mxu0 %v3326_v25  ;;  %v1543_v22 = vmax.f32 %v3928_v53, 0.0 }
 0x265   : > { %v3017_v40 = vpop.eup %3016  ;;  %3036 = vlog2.f32 %v1692_v61  ;;  %v1607_v49 = vsub.f32 0.0, %v1575_v38  ;;  %v1573_v18 = vand.u32 2147483647, %v3937_v20  ;;  %v1541_v58 = vmax.f32 %v3937_v20, 0.0 }
 0x266   : > { %3038 = vlog2.f32 %v1695_v6  ;;  %v1693_v0 = vadd.f32 1.0, %v3017_v40  ;;  %v2713_v16 = vpop.f32.mrf.mxu0 }
 0x267   : > { %v3019_v10 = vpop.eup %3018  ;;  %3040 = vpow2.f32 %v1652_v8  ;;  %v1654_v26 = vmul.f32 1.442695, %v1607_v49  ;;  %v3944_v28 = vadd.f32 %v2713_v16, %v3859_v32  ;;  %v1605_v23 = vsub.f32 0.0, %v1573_v18 }
 0x268   : > { %v1725_v63 = vmul.f32 0.6931472, %v3019_v10  ;;  %3042 = vlog2.f32 %v1693_v0  ;;  %v1465_v27 = vpop.f32.mrf.mxu0  ;;  %v1540_v16 = vmax.f32 %v3925_v5, 0.0 }
 0x269   : > { %v3021_v41 = vpop.eup %3020  ;;  %3044 = vpow2.f32 %v1648_v54  ;;  %v1578_v7 = vand.u32 2147483647, %v3944_v28  ;;  %v3950_v48 = vadd.f32 %v3859_v32, %v1465_v27  ;;  %v1650_v59 = vmul.f32 1.442695, %v1605_v23 }
 0x26a   : > { %v3023_v33 = vpop.eup %3022  ;;  %v1786_v45 = vadd.f32 %v1725_v63, %v1530_v52  ;;  %v1721_v34 = vmul.f32 0.6931472, %v3021_v41  ;;  %3046 = vpow2.f32 %v1654_v26  ;;  %v2714_v38 = vpop.f32.mrf.mxu0 }
 0x26b   : > { %v3025_v44 = vpop.eup %3024  ;;  %v1698_v47 = vadd.f32 1.0, %v3023_v33  ;;  %v1610_v12 = vsub.f32 0.0, %v1578_v7  ;;  %v1576_v11 = vand.u32 2147483647, %v3950_v48  ;;  %3048 = vpow2.f32 %v1650_v59 }
 0x26c   : > { %v3027_v13 = vpop.eup %3026  ;;  %v2516_v8 = vadd.f32 -0.6931472, %v1786_v45  ;;  %v1784_v21 = vadd.f32 %v1721_v34, %v1528_v42  ;;  %v1727_v61 = vmul.f32 0.6931472, %v3025_v44  ;;  %v2868_v42 = vld [vmem:[#allocation7 + $0x8] sm:$0xff]   ;;  %v3968_v27 = vadd.f32 %v2714_v38, %v3859_v32 }
 0x26d   : > { %3050 = vlog2.f32 %v1698_v47  ;;  %v1696_v14 = vadd.f32 1.0, %v3027_v13  ;;  %v1660_v52 = vmul.f32 1.442695, %v1610_v12  ;;  %v1608_v3 = vsub.f32 0.0, %v1576_v11  ;;  %2732 = vmatpush3.bf16.msra.mxu0 %v2868_v42 }
 0x26e   : > { %v3029_v6 = vpop.eup %3028  ;;  %v1850_v40 = vmul.f32 %v2516_v8, %v3908_v60  ;;  %v2514_v54 = vadd.f32 -0.6931472, %v1784_v21  ;;  %v1787_v49 = vadd.f32 %v1727_v61, %v1531_v51  ;;  %2733 = vmatprep.subr.bf16.mxu0 %v3326_v25 }
 0x26f   : > { %v3031_v0 = vpop.eup %3030  ;;  %v1723_v18 = vmul.f32 0.6931472, %v3029_v6  ;;  %3052 = vlog2.f32 %v1696_v14  ;;  %v3972_v33 = vmul.f32 1.442695, %v1608_v3 }
 0x270   : > { %v3033_v10 = vpop.eup %3032  ;;  %v1848_v26 = vmul.f32 %v2514_v54, %v3908_v60  ;;  %v2517_v63 = vadd.f32 -0.6931472, %v1787_v49  ;;  %v1733_v23 = vmul.f32 0.6931472, %v3031_v0  ;;  %3054 = vpow2.f32 %v1660_v52  ;;  %v2870_v49 = vld [vmem:[#allocation8 + $0x18] sm:$0xff]  }
 0x271   : > { %v3035_v51 = vpop.eup %3034  ;;  %v1785_v41 = vadd.f32 %v1723_v18, %v1529_v56  ;;  %v1699_v7 = vadd.f32 1.0, %v3033_v10  ;;  %v1889_v34 = vsel %vm571_vm1, %v1850_v40, 0.0  ;;  %2734 = vmatpush3.bf16.msra.mxu0 %v2869_v29  ;;  %v1579_v54 = vand.u32 2147483647, %v3968_v27  ;;  %2740 = vmatpush3.bf16.msra.mxu1 %v2870_v49 }
 0x272   : > { %v3037_v45 = vpop.eup %3036  ;;  %v1851_v59 = vmul.f32 %v2517_v63, %v3915_v35  ;;  %v1790_v37 = vadd.f32 %v1733_v23, %v1534_v15  ;;  %v1697_v44 = vadd.f32 1.0, %v3035_v51  ;;  %v1880_v12 = vsel %vm571_vm1, %v1848_v26, 0.0  ;;  %2741 = vmatprep.subr.bf16.mxu1 %v3326_v25 }
 0x273   : > { %v3039_v47 = vpop.eup %3038  ;;  %v2515_v30 = vadd.f32 -0.6931472, %v1785_v41  ;;  %v1729_v56 = vmul.f32 0.6931472, %v3037_v45  ;;  %3056 = vlog2.f32 %v1699_v7 }
 0x274   : > { %v3041_v11 = vpop.eup %3040  ;;  %v1890_v13 = vsel %vm571_vm1, %v1851_v59, 0.0  ;;  %v2520_v8 = vadd.f32 -0.6931472, %v1790_v37  ;;  %v1735_v21 = vmul.f32 0.6931472, %v3039_v47  ;;  %3058 = vlog2.f32 %v1697_v44 }
 0x275   : > { %v3043_v61 = vpop.eup %3042  ;;  %v1891_v14 = vadd.f32 %v1890_v13, %v1889_v34  ;;  %v1849_v52 = vmul.f32 %v2515_v30, %v3915_v35  ;;  %v1788_v1 = vadd.f32 %v1729_v56, %v1532_v17  ;;  %v1702_v15 = vadd.f32 1.0, %v3041_v11  ;;  %v3998_v56 = vpop.f32.mrf.mxu0 }
 0x276   : > { %v3045_v3 = vpop.eup %3044  ;;  %v1854_v38 = vmul.f32 %v2520_v8, %v3908_v60  ;;  %v1791_v6 = vadd.f32 %v1735_v21, %v1535_v4  ;;  %v1731_v40 = vmul.f32 0.6931472, %v3043_v61  ;;  %v4039_v53 = vadd.f32 %v3859_v32, %v3998_v56 }
 0x277   : > { %v3047_v42 = vpop.eup %3046  ;;  %v1892_v0 = vrot.slane %v1891_v14, 4  ;;  %v1881_v18 = vsel %vm571_vm1, %v1849_v52, 0.0  ;;  %v2518_v10 = vadd.f32 -0.6931472, %v1788_v1  ;;  %3060 = vlog2.f32 %v1702_v15 }
 0x278   : > { %v1882_v26 = vadd.f32 %v1881_v18, %v1880_v12  ;;  %v1907_v46 = vsel %vm571_vm1, %v1854_v38, 0.0  ;;  %v2521_v17 = vadd.f32 -0.6931472, %v1791_v6  ;;  %v1789_v63 = vadd.f32 %v1731_v40, %v1533_v9  ;;  %v3049_v55 = vpop.eup %3048 }
 0x279   : > { %v1893_v4 = vadd.f32 %v1892_v0, %v1891_v14  ;;  %v1852_v23 = vmul.f32 %v2518_v10, %v3908_v60  ;;  %v1700_v29 = vadd.f32 1.0, %v3045_v3  ;;  %v1703_v51 = vadd.f32 1.0, %v3047_v42  ;;  %v4006_v0 = vpop.f32.mrf.mxu0 }
 0x27a   : > { %v3051_v41 = vpop.eup %3050  ;;  %v1883_v7 = vrot.slane %v1882_v26, 4  ;;  %v1855_v45 = vmul.f32 %v2521_v17, %v3915_v35  ;;  %v2519_v34 = vadd.f32 -0.6931472, %v1789_v63  ;;  %v1701_v59 = vadd.f32 1.0, %v3049_v55 }
 0x27b   : > { %v1894_v37 = vrot.slane %v1893_v4, 2  ;;  %v1898_v44 = vsel %vm571_vm1, %v1852_v23, 0.0  ;;  %v1741_v39 = vmul.f32 0.6931472, %v3051_v41  ;;  %3062 = vlog2.f32 %v1700_v29 }
 0x27c   : > { %v3053_v9 = vpop.eup %3052  ;;  %v1884_v47 = vadd.f32 %v1883_v7, %v1882_v26  ;;  %v1908_v12 = vsel %vm571_vm1, %v1855_v45, 0.0  ;;  %v1853_v30 = vmul.f32 %v2519_v34, %v3915_v35  ;;  %3064 = vlog2.f32 %v1703_v51  ;;  %v4012_v45 = vpop.f32.mrf.mxu0 }
 0x27d   : > { %v1895_v11 = vadd.f32 %v1894_v37, %v1893_v4  ;;  %v1909_v13 = vadd.f32 %v1908_v12, %v1907_v46  ;;  %v1794_v8 = vadd.f32 %v1741_v39, %v1538_v19  ;;  %v1737_v21 = vmul.f32 0.6931472, %v3053_v9  ;;  %v3055_v61 = vpop.eup %3054 }
 0x27e   : > { %v1885_v14 = vrot.slane %v1884_v47, 2  ;;  %v1899_v52 = vsel %vm571_vm1, %v1853_v30, 0.0  ;;  %3066 = vlog2.f32 %v1701_v59  ;;  %v1611_v1 = vsub.f32 0.0, %v1579_v54 }
 0x27f   : > { %v1896_v15 = vrot.slane %v1895_v11, 1  ;;  %v1910_v3 = vrot.slane %v1909_v13, 4  ;;  %v1900_v38 = vadd.f32 %v1899_v52, %v1898_v44  ;;  %v2524_v6 = vadd.f32 -0.6931472, %v1794_v8 }
 0x280   : > { %v3057_v40 = vpop.eup %3056  ;;  %v1886_v49 = vadd.f32 %v1885_v14, %v1884_v47  ;;  %v1792_v42 = vadd.f32 %v1737_v21, %v1536_v36  ;;  %v1706_v19 = vadd.f32 1.0, %v3055_v61  ;;  %3068 = vpow2.f32 %v3972_v33  ;;  %v4021_v61 = vpop.f32.mrf.mxu0 }
 0x281   : > { %v3059_v18 = vpop.eup %3058  ;;  %v1897_v10 = vadd.f32 %v1896_v15, %v1895_v11  ;;  %v1911_v26 = vadd.f32 %v1910_v3, %v1909_v13  ;;  %v1901_v46 = vrot.slane %v1900_v38, 4  ;;  %v1858_v54 = vmul.f32 %v2524_v6, %v3908_v60 }
 0x282   : > { %v1887_v17 = vrot.slane %v1886_v49, 1  ;;  %v2522_v63 = vadd.f32 -0.6931472, %v1792_v42  ;;  %v1743_v55 = vmul.f32 0.6931472, %v3057_v40  ;;  %3070 = vlog2.f32 %v1706_v19 }
 0x283   : > { %v2025_v4 = vpack.c.bf16 %v1897_v10, %v1897_v10  ;;  %v1912_v23 = vrot.slane %v1911_v26, 2  ;;  %v1902_v24 = vadd.f32 %v1901_v46, %v1900_v38  ;;  %v1662_v36 = vmul.f32 1.442695, %v1611_v1  ;;  %v4032_v46 = vpop.f32.mrf.mxu0 }
 0x284   : > { %v3061_v29 = vpop.eup %3060  ;;  %v1888_v51 = vadd.f32 %v1887_v17, %v1886_v49  ;;  %v1795_v41 = vadd.f32 %v1743_v55, %v1539_v62  ;;  %v1739_v7 = vmul.f32 0.6931472, %v3059_v18  ;;  %v1925_v37 = vsel %vm571_vm1, %v1858_v54, 0.0 }
 0x285   : > { %v1913_v34 = vadd.f32 %v1912_v23, %v1911_v26  ;;  %v1903_v59 = vrot.slane %v1902_v24, 2  ;;  %v1749_v44 = vmul.f32 0.6931472, %v3061_v29  ;;  %v1856_v33 = vmul.f32 %v2522_v63, %v3908_v60 }
 0x286   : > { %v2024_v39 = vpack.c.bf16 %v1888_v51, %v1888_v51  ;;  %v2525_v9 = vadd.f32 -0.6931472, %v1795_v41  ;;  %v1793_v47 = vadd.f32 %v1739_v7, %v1537_v50  ;;  %v2072_v12 = vunpack.c.l.b16 %v2025_v4 }
 0x287   : > { %v1914_v43 = vrot.slane %v1913_v34, 1  ;;  %v1904_v62 = vadd.f32 %v1903_v59, %v1902_v24  ;;  %v1798_v30 = vadd.f32 %v1749_v44, %v1542_v2  ;;  %3072 = vpow2.f32 %v1662_v36 }
 0x288   : > { %v3063_v11 = vpop.eup %3062  ;;  %v2071_v13 = vunpack.c.l.b16 %v2024_v39  ;;  %v1859_v8 = vmul.f32 %v2525_v9, %v3915_v35  ;;  %v2523_v21 = vadd.f32 -0.6931472, %v1793_v47  ;;  %v1916_v49 = vsel %vm571_vm1, %v1856_v33, 0.0 }
 0x289   : > { %v3065_v14 = vpop.eup %3064  ;;  %v1915_v52 = vadd.f32 %v1914_v43, %v1913_v34  ;;  %v1905_v1 = vrot.slane %v1904_v62, 1  ;;  %v2528_v15 = vadd.f32 -0.6931472, %v1798_v30  ;;  %v1745_v57 = vmul.f32 0.6931472, %v3063_v11  ;;  %v4043_v34 = vpop.f32.mrf.mxu0 }
 0x28a   : > { %v2088_v50 = vsel %vm2087_vm2, %v2072_v12, %v2071_v13  ;;  %v1926_v3 = vsel %vm571_vm1, %v1859_v8, 0.0  ;;  %v1857_v31 = vmul.f32 %v2523_v21, %v3915_v35  ;;  %v1751_v2 = vmul.f32 0.6931472, %v3065_v14 }
 0x28b   : > { %v3067_v38 = vpop.eup %3066  ;;  %v2027_v6 = vpack.c.bf16 %v1915_v52, %v1915_v52  ;;  %v1906_v40 = vadd.f32 %v1905_v1, %v1904_v62  ;;  %v1927_v42 = vadd.f32 %v1926_v3, %v1925_v37  ;;  %v1796_v18 = vadd.f32 %v1745_v57, %v1540_v16  ;;  %v1497_v11 = vpop.f32.mrf.mxu0 }
 0x28c   : > { %v1917_v19 = vsel %vm571_vm1, %v1857_v31, 0.0  ;;  %v1799_v10 = vadd.f32 %v1751_v2, %v1543_v22  ;;  %v1747_v26 = vmul.f32 0.6931472, %v3067_v38  ;;  %v1862_v55 = vmul.f32 %v2528_v15, %v3908_v60 }
 0x28d   : > { %v2026_v54 = vpack.c.bf16 %v1906_v40, %v1906_v40  ;;  %v1928_v17 = vrot.slane %v1927_v42, 4  ;;  %v1918_v63 = vadd.f32 %v1917_v19, %v1916_v49  ;;  %v2526_v4 = vadd.f32 -0.6931472, %v1796_v18  ;;  %v3069_v36 = vpop.eup %3068  ;;  %v2722_v49 = vpop.f32.mrf.mxu0 }
 0x28e   : > { %v2529_v23 = vadd.f32 -0.6931472, %v1799_v10  ;;  %v1797_v24 = vadd.f32 %v1747_v26, %v1541_v58  ;;  %v2074_v22 = vunpack.c.l.b16 %v2027_v6  ;;  %v1943_v44 = vsel %vm571_vm1, %v1862_v55, 0.0 }
 0x28f   : > { %v2073_v5 = vunpack.c.l.b16 %v2026_v54  ;;  %v1929_v16 = vadd.f32 %v1928_v17, %v1927_v42  ;;  %v1919_v29 = vrot.slane %v1918_v63, 4  ;;  %v1860_v51 = vmul.f32 %v2526_v4, %v3908_v60  ;;  %v3071_v59 = vpop.eup %3070 }
 0x290   : > { %v1863_v41 = vmul.f32 %v2529_v23, %v3915_v35  ;;  %v2527_v7 = vadd.f32 -0.6931472, %v1797_v24  ;;  %v1577_v62 = vand.u32 2147483647, %v4039_v53  ;;  %v4055_v30 = vadd.f32 %v4006_v0, %v3859_v32  ;;  %v1500_v24 = vpop.f32.mrf.mxu0 }
 0x291   : > { %v2090_v20 = vsel %vm2089_vm3, %v2073_v5, %v2088_v50  ;;  %v1920_v58 = vadd.f32 %v1919_v29, %v1918_v63  ;;  %v1930_v33 = vrot.slane %v1929_v16, 2  ;;  %v1934_v12 = vsel %vm571_vm1, %v1860_v51, 0.0 }
 0x292   : > { %v2092_v37 = vsel %vm2091_vm4, %v2074_v22, %v2090_v20  ;;  %v1944_v39 = vsel %vm571_vm1, %v1863_v41, 0.0  ;;  %v1861_v56 = vmul.f32 %v2527_v7, %v3915_v35  ;;  %v1757_v52 = vmul.f32 0.6931472, %v3071_v59 }
 0x293   : > { %v1921_v9 = vrot.slane %v1920_v58, 2  ;;  %v1945_v47 = vadd.f32 %v1944_v39, %v1943_v44  ;;  %v1546_v1 = vmax.f32 %v3944_v28, 0.0  ;;  %v1704_v15 = vadd.f32 1.0, %v3069_v36 }
 0x294   : > { %v1935_v43 = vsel %vm571_vm1, %v1861_v56, 0.0  ;;  %v3073_v13 = vpop.eup %3072  ;;  %v1609_v50 = vsub.f32 0.0, %v1577_v62  ;;  %v1931_v3 = vadd.f32 %v1930_v33, %v1929_v16  ;;  %v1582_v0 = vand.u32 2147483647, %v4055_v30 }
 0x295   : > { %v1922_v8 = vadd.f32 %v1921_v9, %v1920_v58  ;;  %v1946_v21 = vrot.slane %v1945_v47, 4  ;;  %v1936_v14 = vadd.f32 %v1935_v43, %v1934_v12  ;;  %v1707_v57 = vadd.f32 1.0, %v3073_v13 }
 0x296   : > { %v1658_v6 = vmul.f32 1.442695, %v1609_v50  ;;  %v4061_v40 = vadd.f32 %v3859_v32, %v4012_v45  ;;  %v1802_v28 = vadd.f32 %v1757_v52, %v1546_v1  ;;  %v1614_v10 = vsub.f32 0.0, %v1582_v0 }
 0x297   : > { %v1923_v31 = vrot.slane %v1922_v8, 1  ;;  %v1947_v2 = vadd.f32 %v1946_v21, %v1945_v47  ;;  %v1937_v38 = vrot.slane %v1936_v14, 4  ;;  %3074 = vlog2.f32 %v1707_v57 }
 0x298   : > { %3076 = vpow2.f32 %v1658_v6  ;;  %v1932_v26 = vrot.slane %v1931_v3, 1  ;;  %v1668_v55 = vmul.f32 1.442695, %v1614_v10  ;;  %v1580_v4 = vand.u32 2147483647, %v4061_v40 }
 0x299   : > { %v1924_v42 = vadd.f32 %v1923_v31, %v1922_v8  ;;  %v1948_v19 = vrot.slane %v1947_v2, 2  ;;  %v1938_v18 = vadd.f32 %v1937_v38, %v1936_v14  ;;  %v4066_v23 = vadd.f32 %v4021_v61, %v3859_v32 }
 0x29a   : > { %v4070_v45 = vadd.f32 %v3859_v32, %v4032_v46  ;;  %v2532_v16 = vadd.f32 -0.6931472, %v1802_v28  ;;  %3078 = vlog2.f32 %v1704_v15  ;;  %v1612_v29 = vsub.f32 0.0, %v1580_v4  ;;  %v2725_v46 = vpop.f32.mrf.mxu0 }
 0x29b   : > { %v2028_v54 = vpack.c.bf16 %v1924_v42, %v1924_v42  ;;  %v1949_v17 = vadd.f32 %v1948_v19, %v1947_v2  ;;  %v1939_v63 = vrot.slane %v1938_v18, 2  ;;  %3080 = vpow2.f32 %v1668_v55 }
 0x29c   : > { %v1583_v22 = vand.u32 2147483647, %v4066_v23  ;;  %v1933_v51 = vadd.f32 %v1932_v26, %v1931_v3  ;;  %v1664_v61 = vmul.f32 1.442695, %v1612_v29  ;;  %v1581_v20 = vand.u32 2147483647, %v4070_v45  ;;  %v1513_v13 = vpop.f32.mrf.mxu0 }
 0x29d   : > { %v2075_v36 = vunpack.c.l.b16 %v2028_v54  ;;  %v1940_v5 = vadd.f32 %v1939_v63, %v1938_v18  ;;  %v1950_v7 = vrot.slane %v1949_v17, 1  ;;  %v1866_v44 = vmul.f32 %v2532_v16, %v3908_v60 }
 0x29e   : > { %v1615_v59 = vsub.f32 0.0, %v1583_v22  ;;  %v4080_v39 = vadd.f32 %v4043_v34, %v3859_v32  ;;  %3082 = vpow2.f32 %v1664_v61  ;;  %v1613_v33 = vsub.f32 0.0, %v1581_v20 }
 0x29f   : > { %v4074_v41 = vsel %vm2093_vm5, %v2075_v36, %v2092_v37  ;;  %v1941_v58 = vrot.slane %v1940_v5, 1  ;;  %v4083_v9 = vadd.f32 %v3859_v32, %v1497_v11  ;;  %v2029_v37 = vpack.c.bf16 %v1933_v51, %v1933_v51 }
 0x2a0   : > { %v1670_v56 = vmul.f32 1.442695, %v1615_v59  ;;  %v1547_v47 = vmax.f32 %v3968_v27, 0.0  ;;  %v4086_v12 = vadd.f32 %v1950_v7, %v1949_v17  ;;  %v1666_v43 = vmul.f32 1.442695, %v1613_v33 }
 0x2a1   : > { %v1586_v62 = vand.u32 2147483647, %v4080_v39  ;;  %v1942_v21 = vadd.f32 %v1941_v58, %v1940_v5  ;;  %v1961_v34 = vsel %vm571_vm1, %v1866_v44, 0.0  ;;  %v1584_v14 = vand.u32 2147483647, %v4083_v9 }
 0x2a2   : > { %3084 = vpow2.f32 %v1670_v56  ;;  %v4092_v52 = vadd.f32 %v2722_v49, %v3859_v32  ;;  %v4095_v1 = vadd.f32 %v3859_v32, %v1500_v24  ;;  %v2076_v57 = vunpack.c.l.b16 %v2029_v37  ;;  %v2726_v49 = vpop.f32.mrf.mxu0 }
 0x2a3   : > { %3086 = vpow2.f32 %v1666_v43  ;;  %v1618_v27 = vsub.f32 0.0, %v1586_v62  ;;  %v1616_v50 = vsub.f32 0.0, %v1584_v14  ;;  %v4099_v31 = vadd.f32 %v2725_v46, %v3859_v32 }
 0x2a4   : > { %v3075_v8 = vpop.eup %3074  ;;  %v1587_v3 = vand.u32 2147483647, %v4092_v52  ;;  %v2031_v2 = vpack.c.bf16 %v4086_v12, %v4086_v12  ;;  %v2030_v42 = vpack.c.bf16 %v1942_v21, %v1942_v21  ;;  %v1585_v28 = vand.u32 2147483647, %v4095_v1  ;;  %v1516_v7 = vpop.f32.mrf.mxu0 }
 0x2a5   : > { %v1759_v11 = vmul.f32 0.6931472, %v3075_v8  ;;  %v3077_v15 = vpop.eup %3076  ;;  %v1676_v0 = vmul.f32 1.442695, %v1618_v27  ;;  %v1672_v19 = vmul.f32 1.442695, %v1616_v50  ;;  %v4106_v17 = vadd.f32 %v3859_v32, %v1513_v13 }
 0x2a6   : > { %v1705_v6 = vadd.f32 1.0, %v3077_v15  ;;  %v1619_v18 = vsub.f32 0.0, %v1587_v3  ;;  %v1590_v54 = vand.u32 2147483647, %v4099_v31  ;;  %v1617_v4 = vsub.f32 0.0, %v1585_v28 }
 0x2a7   : > { %v1803_v38 = vadd.f32 %v1759_v11, %v1547_v47  ;;  %v3079_v10 = vpop.eup %3078  ;;  %v4109_v24 = vadd.f32 %v2726_v49, %v3859_v32  ;;  %v2077_v29 = vunpack.c.l.b16 %v2030_v42  ;;  %v1588_v51 = vand.u32 2147483647, %v4106_v17 }
 0x2a8   : > { %3088 = vlog2.f32 %v1705_v6  ;;  %v3081_v63 = vpop.eup %3080  ;;  %v1678_v55 = vmul.f32 1.442695, %v1619_v18  ;;  %v1622_v16 = vsub.f32 0.0, %v1590_v54  ;;  %v1674_v22 = vmul.f32 1.442695, %v1617_v4 }
 0x2a9   : > { %v2533_v26 = vadd.f32 -0.6931472, %v1803_v38  ;;  %3090 = vpow2.f32 %v1676_v0  ;;  %v1710_v5 = vadd.f32 1.0, %v3081_v63  ;;  %v1753_v61 = vmul.f32 0.6931472, %v3079_v10 }
 0x2aa   : > { %3092 = vpow2.f32 %v1672_v19  ;;  %v1684_v20 = vmul.f32 1.442695, %v1622_v16  ;;  %v1620_v44 = vsub.f32 0.0, %v1588_v51  ;;  %v1591_v56 = vand.u32 2147483647, %v4109_v24 }
 0x2ab   : > { %v1867_v36 = vmul.f32 %v2533_v26, %v3915_v35  ;;  %3094 = vpow2.f32 %v1678_v55  ;;  %v3083_v46 = vpop.eup %3082  ;;  %v4116_v37 = vadd.f32 %v3859_v32, %v1516_v7  ;;  %v2096_v47 = vsel %vm2095_vm6, %v2076_v57, %v4074_v41 }
 0x2ac   : > { %3096 = vlog2.f32 %v1710_v5  ;;  %v1708_v33 = vadd.f32 1.0, %v3083_v46  ;;  %v2078_v43 = vunpack.c.l.b16 %v2031_v2  ;;  %v1680_v62 = vmul.f32 1.442695, %v1620_v44 }
 0x2ad   : > { %v1962_v59 = vsel %vm571_vm1, %v1867_v36, 0.0  ;;  %3098 = vpow2.f32 %v1674_v22  ;;  %v1623_v13 = vsub.f32 0.0, %v1591_v56  ;;  %v2098_v8 = vsel %vm2097_vm7, %v2077_v29, %v2096_v47 }
 0x2ae   : > { %v1963_v58 = vadd.f32 %v1962_v59, %v1961_v34  ;;  %3100 = vpow2.f32 %v1684_v20  ;;  %v1544_v21 = vmax.f32 %v3950_v48, 0.0  ;;  %v1589_v14 = vand.u32 2147483647, %v4116_v37 }
 0x2af   : > { %v3085_v12 = vpop.eup %3084  ;;  %3102 = vlog2.f32 %v1708_v33  ;;  %v1686_v32 = vmul.f32 1.442695, %v1623_v13  ;;  %v4124_v15 = vsel %vm2099_vm8, %v2078_v43, %v2098_v8  ;;  %v1545_v0 = vmax.f32 %v4039_v53, 0.0 }
 0x2b0   : > { %v1711_v34 = vadd.f32 1.0, %v3085_v12  ;;  %v3087_v11 = vpop.eup %3086  ;;  %v1964_v27 = vrot.slane %v1963_v58, 4  ;;  %3104 = vpow2.f32 %v1680_v62  ;;  %v1800_v41 = vadd.f32 %v1753_v61, %v1544_v21 }
 0x2b1   : > { %v1709_v57 = vadd.f32 1.0, %v3087_v11  ;;  %v1621_v50 = vsub.f32 0.0, %v1589_v14  ;;  %v1550_v63 = vmax.f32 %v4055_v30, 0.0  ;;  %v1548_v20 = vmax.f32 %v4061_v40, 0.0 }
 0x2b2   : > { %3106 = vlog2.f32 %v1711_v34  ;;  %v1965_v48 = vadd.f32 %v1964_v27, %v1963_v58  ;;  %v2530_v6 = vadd.f32 -0.6931472, %v1800_v41  ;;  %v1551_v47 = vmax.f32 %v4066_v23, 0.0 }
 0x2b3   : > { %3108 = vpow2.f32 %v1686_v32  ;;  %v1682_v3 = vmul.f32 1.442695, %v1621_v50  ;;  %v1549_v21 = vmax.f32 %v4070_v45, 0.0  ;;  %v1552_v23 = vmax.f32 %v4083_v9, 0.0 }
 0x2b4   : > { %3110 = vlog2.f32 %v1709_v57  ;;  %v1966_v54 = vrot.slane %v1965_v48, 2  ;;  %v1864_v36 = vmul.f32 %v2530_v6, %v3908_v60  ;;  %v1554_v57 = vmax.f32 %v4080_v39, 0.0 }
 0x2b5   : > { %v3089_v2 = vpop.eup %3088  ;;  %3112 = vpow2.f32 %v1682_v3 }
 0x2b6   : > { %v3091_v38 = vpop.eup %3090  ;;  %v1755_v49 = vmul.f32 0.6931472, %v3089_v2  ;;  %v1967_v59 = vadd.f32 %v1966_v54, %v1965_v48  ;;  %v1952_v46 = vsel %vm571_vm1, %v1864_v36, 0.0  ;;  %v1555_v2 = vmax.f32 %v4092_v52, 0.0 }
 0x2b7   : > { %v3093_v42 = vpop.eup %3092  ;;  %v1714_v19 = vadd.f32 1.0, %v3091_v38  ;;  %v1556_v54 = vmax.f32 %v4106_v17, 0.0 }
 0x2b8   : > { %v3095_v18 = vpop.eup %3094  ;;  %v1801_v28 = vadd.f32 %v1755_v49, %v1545_v0  ;;  %v1712_v10 = vadd.f32 1.0, %v3093_v42  ;;  %v1968_v34 = vrot.slane %v1967_v59, 1  ;;  %v1553_v42 = vmax.f32 %v4095_v1, 0.0 }
 0x2b9   : > { %v3097_v26 = vpop.eup %3096  ;;  %3114 = vlog2.f32 %v1714_v19  ;;  %v1715_v55 = vadd.f32 1.0, %v3095_v18  ;;  %v1558_v19 = vmax.f32 %v4099_v31, 0.0 }
 0x2ba   : > { %v3099_v4 = vpop.eup %3098  ;;  %v2531_v5 = vadd.f32 -0.6931472, %v1801_v28  ;;  %v1765_v16 = vmul.f32 0.6931472, %v3097_v26  ;;  %3116 = vlog2.f32 %v1712_v10  ;;  %v1969_v0 = vadd.f32 %v1968_v34, %v1967_v59 }
 0x2bb   : > { %v3101_v53 = vpop.eup %3100  ;;  %3118 = vlog2.f32 %v1715_v55  ;;  %v1713_v29 = vadd.f32 1.0, %v3099_v4  ;;  %v1557_v34 = vmax.f32 %v4116_v37, 0.0 }
 0x2bc   : > { %v1865_v22 = vmul.f32 %v2531_v5, %v3915_v35  ;;  %v1806_v51 = vadd.f32 %v1765_v16, %v1550_v63  ;;  %v1718_v7 = vadd.f32 1.0, %v3101_v53  ;;  %v3103_v61 = vpop.eup %3102  ;;  %v1559_v63 = vmax.f32 %v4109_v24, 0.0 }
 0x2bd   : > { %3120 = vlog2.f32 %v1713_v29  ;;  %v3105_v30 = vpop.eup %3104  ;;  %v1761_v44 = vmul.f32 0.6931472, %v3103_v61 }
 0x2be   : > { %v1953_v58 = vsel %vm571_vm1, %v1865_v22, 0.0  ;;  %3122 = vlog2.f32 %v1718_v7  ;;  %v1716_v12 = vadd.f32 1.0, %v3105_v30  ;;  %v2536_v62 = vadd.f32 -0.6931472, %v1806_v51 }
 0x2bf   : > { %v3107_v56 = vpop.eup %3106  ;;  %v1954_v33 = vadd.f32 %v1953_v58, %v1952_v46  ;;  %v1804_v13 = vadd.f32 %v1761_v44, %v1548_v20  ;;  %v2033_v51 = vpack.c.bf16 %v1969_v0, %v1969_v0 }
 0x2c0   : > { %v3109_v43 = vpop.eup %3108  ;;  %v1767_v8 = vmul.f32 0.6931472, %v3107_v56  ;;  %3124 = vlog2.f32 %v1716_v12  ;;  %v1870_v48 = vmul.f32 %v2536_v62, %v3908_v60 }
 0x2c1   : > { %v3111_v40 = vpop.eup %3110  ;;  %v1955_v14 = vrot.slane %v1954_v33, 4  ;;  %v1719_v11 = vadd.f32 1.0, %v3109_v43  ;;  %v2534_v27 = vadd.f32 -0.6931472, %v1804_v13 }
 0x2c2   : > { %v1807_v32 = vadd.f32 %v1767_v8, %v1551_v47  ;;  %v1763_v41 = vmul.f32 0.6931472, %v3111_v40  ;;  %v3113_v50 = vpop.eup %3112  ;;  %v1979_v4 = vsel %vm571_vm1, %v1870_v48, 0.0 }
 0x2c3   : > { %v1956_v3 = vadd.f32 %v1955_v14, %v1954_v33  ;;  %3126 = vlog2.f32 %v1719_v11  ;;  %v1717_v6 = vadd.f32 1.0, %v3113_v50  ;;  %v1868_v39 = vmul.f32 %v2534_v27, %v3908_v60 }
 0x2c4   : > { %v2537_v45 = vadd.f32 -0.6931472, %v1807_v32  ;;  %v1805_v38 = vadd.f32 %v1763_v41, %v1549_v21  ;;  %v2080_v14 = vunpack.c.l.b16 %v2033_v51 }
 0x2c5   : > { %v1957_v49 = vrot.slane %v1956_v3, 2  ;;  %3128 = vlog2.f32 %v1717_v6  ;;  %v1970_v7 = vsel %vm571_vm1, %v1868_v39, 0.0 }
 0x2c6   : > { %v3115_v18 = vpop.eup %3114  ;;  %v1871_v28 = vmul.f32 %v2537_v45, %v3915_v35  ;;  %v2535_v9 = vadd.f32 -0.6931472, %v1805_v38 }
 0x2c7   : > { %v3117_v52 = vpop.eup %3116  ;;  %v1958_v10 = vadd.f32 %v1957_v49, %v1956_v3  ;;  %v1773_v26 = vmul.f32 0.6931472, %v3115_v18 }
 0x2c8   : > { %v3119_v55 = vpop.eup %3118  ;;  %v1980_v1 = vsel %vm571_vm1, %v1871_v28, 0.0  ;;  %v1869_v31 = vmul.f32 %v2535_v9, %v3915_v35  ;;  %v1769_v36 = vmul.f32 0.6931472, %v3117_v52 }
 0x2c9   : > { %v1959_v5 = vrot.slane %v1958_v10, 1  ;;  %v1981_v16 = vadd.f32 %v1980_v1, %v1979_v4  ;;  %v1810_v53 = vadd.f32 %v1773_v26, %v1554_v57  ;;  %v1775_v29 = vmul.f32 0.6931472, %v3119_v55 }
 0x2ca   : > { %v3121_v22 = vpop.eup %3120  ;;  %v1971_v17 = vsel %vm571_vm1, %v1869_v31, 0.0  ;;  %v1808_v61 = vadd.f32 %v1769_v36, %v1552_v23 }
 0x2cb   : > { %v3123_v24 = vpop.eup %3122  ;;  %v1960_v59 = vadd.f32 %v1959_v5, %v1958_v10  ;;  %v1982_v20 = vrot.slane %v1981_v16, 4  ;;  %v1972_v30 = vadd.f32 %v1971_v17, %v1970_v7  ;;  %v2540_v46 = vadd.f32 -0.6931472, %v1810_v53 }
 0x2cc   : > { %v2538_v58 = vadd.f32 -0.6931472, %v1808_v61  ;;  %v1811_v44 = vadd.f32 %v1775_v29, %v1555_v2  ;;  %v1771_v56 = vmul.f32 0.6931472, %v3121_v22  ;;  %v1781_v33 = vmul.f32 0.6931472, %v3123_v24 }
 0x2cd   : > { %v2032_v47 = vpack.c.bf16 %v1960_v59, %v1960_v59  ;;  %v1983_v12 = vadd.f32 %v1982_v20, %v1981_v16  ;;  %v1973_v43 = vrot.slane %v1972_v30, 4  ;;  %v1874_v62 = vmul.f32 %v2540_v46, %v3908_v60  ;;  %v3125_v13 = vpop.eup %3124 }
 0x2ce   : > { %v2541_v8 = vadd.f32 -0.6931472, %v1811_v44  ;;  %v1809_v21 = vadd.f32 %v1771_v56, %v1553_v42  ;;  %v1814_v40 = vadd.f32 %v1781_v33, %v1558_v19  ;;  %v1872_v50 = vmul.f32 %v2538_v58, %v3908_v60 }
 0x2cf   : > { %v2079_v11 = vunpack.c.l.b16 %v2032_v47  ;;  %v1984_v27 = vrot.slane %v1983_v12, 2  ;;  %v1974_v32 = vadd.f32 %v1973_v43, %v1972_v30  ;;  %v1997_v57 = vsel %vm571_vm1, %v1874_v62, 0.0 }
 0x2d0   : > { %v3127_v41 = vpop.eup %3126  ;;  %v1875_v3 = vmul.f32 %v2541_v8, %v3915_v35  ;;  %v2539_v23 = vadd.f32 -0.6931472, %v1809_v21  ;;  %v1777_v38 = vmul.f32 0.6931472, %v3125_v13  ;;  %v2544_v0 = vadd.f32 -0.6931472, %v1814_v40 }
 0x2d1   : > { %v2101_v2 = vsel %vm2087_vm2, %v2080_v14, %v2079_v11  ;;  %v1985_v48 = vadd.f32 %v1984_v27, %v1983_v12  ;;  %v1975_v45 = vrot.slane %v1974_v32, 2  ;;  %v1783_v49 = vmul.f32 0.6931472, %v3127_v41 }
 0x2d2   : > { %v1998_v6 = vsel %vm571_vm1, %v1875_v3, 0.0  ;;  %v1873_v37 = vmul.f32 %v2539_v23, %v3915_v35  ;;  %v3129_v42 = vpop.eup %3128  ;;  %v1812_v28 = vadd.f32 %v1777_v38, %v1556_v54  ;;  %v1988_v9 = vsel %vm571_vm1, %v1872_v50, 0.0 }
 0x2d3   : > { %v1986_v19 = vrot.slane %v1985_v48, 1  ;;  %v1976_v18 = vadd.f32 %v1975_v45, %v1974_v32  ;;  %v1999_v39 = vadd.f32 %v1998_v6, %v1997_v57  ;;  %v1815_v10 = vadd.f32 %v1783_v49, %v1559_v63 }
 0x2d4   : > { %v1989_v52 = vsel %vm571_vm1, %v1873_v37, 0.0  ;;  %v1779_v26 = vmul.f32 0.6931472, %v3129_v42  ;;  %v1878_v36 = vmul.f32 %v2544_v0, %v3908_v60  ;;  %v2542_v5 = vadd.f32 -0.6931472, %v1812_v28 }
 0x2d5   : > { %v1987_v55 = vadd.f32 %v1986_v19, %v1985_v48  ;;  %v1977_v4 = vrot.slane %v1976_v18, 1  ;;  %v2000_v1 = vrot.slane %v1999_v39, 4  ;;  %v1990_v31 = vadd.f32 %v1989_v52, %v1988_v9 }
 0x2d6   : > { %v2545_v16 = vadd.f32 -0.6931472, %v1815_v10  ;;  %v1813_v53 = vadd.f32 %v1779_v26, %v1557_v34  ;;  %v1876_v54 = vmul.f32 %v2542_v5, %v3908_v60  ;;  %v2015_v20 = vsel %vm571_vm1, %v1878_v36, 0.0  ;;  %v2871_v26 = vld [vmem:[#allocation8 + $0x10] sm:$0xff]  }
 0x2d7   : > { %v1978_v29 = vadd.f32 %v1977_v4, %v1976_v18  ;;  %v2001_v22 = vadd.f32 %v2000_v1, %v1999_v39  ;;  %v1991_v51 = vrot.slane %v1990_v31, 4  ;;  %v2035_v7 = vpack.c.bf16 %v1987_v55, %v1987_v55  ;;  %2742 = vmatpush3.bf16.msra.mxu1 %v2871_v26  ;;  %v2872_v55 = vld [vmem:[#allocation8 + $0x8] sm:$0xff]   ;;  %v2873_v4 = vld [vmem:[#allocation8] sm:$0xff]  }
 0x2d8   : > { %v1879_v17 = vmul.f32 %v2545_v16, %v3915_v35  ;;  %v2543_v61 = vadd.f32 -0.6931472, %v1813_v53  ;;  %v2006_v12 = vsel %vm571_vm1, %v1876_v54, 0.0  ;;  %2743 = vmatprep.subr.bf16.mxu1 %v3326_v25  ;;  %v2546_v1 = vld [vmem:[%s4247_s9] ss:$0 sm:$0xff] }
 0x2d9   : > { %v2034_v63 = vpack.c.bf16 %v1978_v29, %v1978_v29  ;;  %v2002_v24 = vrot.slane %v2001_v22, 2  ;;  %v1992_v59 = vadd.f32 %v1991_v51, %v1990_v31  ;;  %v2082_v47 = vunpack.c.l.b16 %v2035_v7 }
 0x2da   : > { %v2016_v30 = vsel %vm571_vm1, %v1879_v17, 0.0  ;;  %v1877_v46 = vmul.f32 %v2543_v61, %v3915_v35 }
 0x2db   : > { %v2081_v58 = vunpack.c.l.b16 %v2034_v63  ;;  %v2003_v44 = vadd.f32 %v2002_v24, %v2001_v22  ;;  %v1993_v56 = vrot.slane %v1992_v59, 2  ;;  %v2017_v33 = vadd.f32 %v2016_v30, %v2015_v20  ;;  %2744 = vmatpush3.bf16.msra.mxu1 %v2872_v55 }
 0x2dc   : > { %v2007_v60 = vsel %vm571_vm1, %v1877_v46, 0.0  ;;  %2745 = vmatprep.subr.bf16.mxu1 %v3326_v25 }
 0x2dd   : > { %v2102_v43 = vsel %vm2089_vm3, %v2081_v58, %v2101_v2  ;;  %v2004_v62 = vrot.slane %v2003_v44, 1  ;;  %v1994_v13 = vadd.f32 %v1993_v56, %v1992_v59  ;;  %v2018_v8 = vrot.slane %v2017_v33, 4 }
 0x2de   : > { %v2103_v21 = vsel %vm2091_vm4, %v2082_v47, %v2102_v43  ;;  %v2008_v40 = vadd.f32 %v2007_v60, %v2006_v12  ;;  %v2554_v43 = vld [vmem:[%s4249_s11] ss:$0 sm:$0xff] }
 0x2df   : > { %v2005_v34 = vadd.f32 %v2004_v62, %v2003_v44  ;;  %v1995_v14 = vrot.slane %v1994_v13, 1  ;;  %v2019_v35 = vadd.f32 %v2018_v8, %v2017_v33  ;;  %2746 = vmatpush3.bf16.msra.mxu1 %v2873_v4 }
 0x2e0   : > { %v2009_v11 = vrot.slane %v2008_v40, 4 }
 0x2e1   : > { %v1996_v27 = vadd.f32 %v1995_v14, %v1994_v13  ;;  %v2020_v32 = vrot.slane %v2019_v35, 2  ;;  %v2037_v41 = vpack.c.bf16 %v2005_v34, %v2005_v34 }
 0x2e2   : > { %v2010_v57 = vadd.f32 %v2009_v11, %v2008_v40  ;;  %v3139_v11 = vld [vmem:[%s3622_s8 + $0x8] sm:$0xff] }
 0x2e3   : > { %v2036_v50 = vpack.c.bf16 %v1996_v27, %v1996_v27  ;;  %v2021_v3 = vadd.f32 %v2020_v32, %v2019_v35  ;;  %v2084_v2 = vunpack.c.l.b16 %v2037_v41 }
 0x2e4   : > { %v2011_v23 = vrot.slane %v2010_v57, 2 }
 0x2e5   : > { %v2083_v48 = vunpack.c.l.b16 %v2036_v50  ;;  %v2022_v45 = vrot.slane %v2021_v3, 1 }
 0x2e6   : > { %v2012_v38 = vadd.f32 %v2011_v23, %v2010_v57 }
 0x2e7   : > { %v2104_v6 = vsel %vm2093_vm5, %v2083_v48, %v2103_v21  ;;  %v2023_v37 = vadd.f32 %v2022_v45, %v2021_v3  ;;  %v3138_v21 = vld [vmem:[%s3622_s8] sm:$0xff] }
 0x2e8   : > { %v2013_v0 = vrot.slane %v2012_v38, 1  ;;  %v2105_v49 = vsel %vm2095_vm6, %v2084_v2, %v2104_v6 }
 0x2e9   : > { %v2039_v19 = vpack.c.bf16 %v2023_v37, %v2023_v37 }
 0x2ea   : > { %v2014_v42 = vadd.f32 %v2013_v0, %v2012_v38 }
 0x2eb   : > { %v2086_v28 = vunpack.c.l.b16 %v2039_v19 }
 0x2ec   : > { %v2038_v18 = vpack.c.bf16 %v2014_v42, %v2014_v42 }
 0x2ee   : > { %v2085_v39 = vunpack.c.l.b16 %v2038_v18 }
 0x2f0   : > { %v2106_v9 = vsel %vm2097_vm7, %v2085_v39, %v2105_v49 }
 0x2f1   : > { %v2107_v52 = vsel %vm2099_vm8, %v2086_v28, %v2106_v9 }
 0x2f2   : > { %v2108_v10 = vpack.c.b16 %v2107_v52, %v4124_v15 }
 0x2f4   : > { %2736 = vmatmul.mubr.msk.bf16.vlgmr.msra.gmra.mxu0 %vm571_vm1, %v2108_v10 }
 0x3b4   : > { %v2170_v31 = vpop.f32.mrf.mxu0 }
 0x3b5   : > { %v2171_v36 = vadd.f32 %v2546_v1, %v2170_v31 }
 0x3b6   : > { %v2737_v5 = vpop.f32.mrf.mxu0 }
 0x3b7   : > { %v2179_v15 = vand.u32 2147483647, %v2171_v36  ;;  %v2177_v30 = vmax.f32 %v2171_v36, 0.0 }
 0x3b8   : > { %v2173_v16 = vpop.f32.mrf.mxu0 }
 0x3b9   : > { %v2181_v53 = vsub.f32 0.0, %v2179_v15  ;;  %v2174_v29 = vadd.f32 %v2546_v1, %v2173_v16 }
 0x3ba   : > { %v2738_v22 = vpop.f32.mrf.mxu0 }
 0x3bb   : > { %v2183_v51 = vmul.f32 1.442695, %v2181_v53  ;;  %v2180_v7 = vand.u32 2147483647, %v2174_v29  ;;  %v2178_v44 = vmax.f32 %v2174_v29, 0.0 }
 0x3bd   : > { %3130 = vpow2.f32 %v2183_v51  ;;  %v2182_v54 = vsub.f32 0.0, %v2180_v7 }
 0x3bf   : > { %v2185_v17 = vmul.f32 1.442695, %v2182_v54 }
 0x3c1   : > { %3132 = vpow2.f32 %v2185_v17 }
 0x3ca   : > { %v3131_v25 = vpop.eup %3130 }
 0x3cb   : > { %v2187_v61 = vadd.f32 1.0, %v3131_v25 }
 0x3cd   : > { %3134 = vlog2.f32 %v2187_v61 }
 0x3ce   : > { %v3133_v63 = vpop.eup %3132 }
 0x3cf   : > { %v2188_v24 = vadd.f32 1.0, %v3133_v63 }
 0x3d1   : > { %3136 = vlog2.f32 %v2188_v24 }
 0x3da   : > { %v3135_v59 = vpop.eup %3134 }
 0x3db   : > { %v2190_v20 = vmul.f32 0.6931472, %v3135_v59 }
 0x3dd   : > { %v2193_v58 = vadd.f32 %v2190_v20, %v2177_v30 }
 0x3de   : > { %v3137_v46 = vpop.eup %3136 }
 0x3df   : > { %v2192_v56 = vmul.f32 0.6931472, %v3137_v46  ;;  %v2552_v47 = vadd.f32 -0.6931472, %v2193_v58 }
 0x3e1   : > { %v2194_v33 = vadd.f32 %v2192_v56, %v2178_v44 }
 0x3e3   : > { %v2553_v12 = vadd.f32 -0.6931472, %v2194_v33 }
 0x3e5   : > { %v2197_v60 = vpack.c.bf16 %v2553_v12, %v2552_v47 }
 0x3e7   : > { %2748 = vmatmul.mubr.msk.bf16.vlgmr.msra.gmra.mxu1 %vm571_vm1, %v2197_v60 }
 0x4a7   : > { %v2274_v62 = vpop.f32.mrf.mxu1 }
 0x4a8   : > { %v2275_v13 = vadd.f32 %v2554_v43, %v2274_v62 }
 0x4a9   : > { %v2749_v8 = vpop.f32.mrf.mxu1 }
 0x4aa   : > { %v2281_v40 = vadd.f32 %v3138_v21, %v2275_v13 }
 0x4ab   : > { %v2277_v34 = vpop.f32.mrf.mxu1 }
 0x4ac   : > { %2283 = vst.msk [vmem:[%s490_s6] sm:$0xff] %vm571_vm1, %v2281_v40  ;;  %v2278_v14 = vadd.f32 %v2554_v43, %v2277_v34 }
 0x4ad   : > { %v2750_v35 = vpop.f32.mrf.mxu1 }
 0x4ae   : > { %v2282_v27 = vadd.f32 %v3139_v11, %v2278_v14 }
 0x4b0   : > { %2284 = vst.msk [vmem:[%s490_s6 + $0x8] sm:$0xff] %vm571_vm1, %v2282_v27 }
 0x4b1   : > { %3259 = shalt.err (!%p3256_p6)
}
 0x4b2   : > { %s3260_s8 = scalar_lea.hbm %s4192_s15, 256  ;;  %s3264_s23 = scalar_lea.hbm %s4250_s12, 1024 }
 0x4b3   : > { %p3261_p4 = scmp.ne.s32.totalorder %s4192_s15, %s3260_s8  ;;  %p3265_p10 = scmp.lt.s32.totalorder %s4192_s15, %s4250_s12 }
 0x4b4   : > { %p3266_p3 = scmp.lt.s32.totalorder %s3264_s23, %s3260_s8 }
 0x4b5   : > { %p3262_p8 = pnand %p3261_p4, %p4282_p11 }
 0x4b6   : > { %p3267_p7 = por %p3266_p3, %p3265_p10 }
 0x4b7   : > { %p3263_p0 = pneg %p3262_p8 }
 0x4b9   : > { %p3268_p1 = pnand %p3267_p7, %p3263_p0 }
 0x4bb   : > { %3271 = shalt.err (!%p3268_p1)
}
 0x4bc   : > { %s3329_s27 = smov 128   ;;  %s3330_s26 = smov 8  }
 0x4bd   : > { %2765 = dma.vmem_to_hbm [thread:$0]  (%p4282_p11), %s4194_s29, 256, %s4192_s15, %s2286_s25, %s3329_s27, %s3329_s27, %s3330_s26  }
 0x4be PF: > { %s4283_s14 = sld [smem:[#allocation16_spill]]  ;;  %p2792_p9 = scmp.ge.s32.totalorder %s3318_s24, 2 }
 0x4bf   : > { %s2314_s30 = sand.u32 1, %s3306_s21  }
 0x4c0   : > { %s2315_s13 = scalar_lea.sflag [#allocation4], %s2314_s30 }
 0x4c4   : > { %p4284_p12 = scmp.ne.s32.totalorder %s4283_s14, 0 }
 0x4c6   : > { %p2782_p13 = pnand %p2792_p9, %p4284_p12 }
 0x4c8   : > { %p2783_p2 = pneg %p2782_p13 }
 0x4ca   : > { %3301 = dma.done.wait (%p2783_p2), %s2315_s13, 256  }
 0x4cb   : > { %3303 = vsyncadd (%p2783_p2), %s2315_s13, 4294967040  ;;  %s4285_s20 = sld [smem:[#allocation15_spill]]  ;;  %p27_p5 = scmp.ge.s32.totalorder %s3484_s16, 6  }
 0x4cc   : > { %s4286_s23 = sld [smem:[#allocation17_spill]]  ;;  %s4287_s21 = smov %s3310_s22 }
 0x4cd   : > { %s4289_s24 = smov %s3484_s16  ;;  %29 = sbr.rel (!%p27_p5) target bundleno = 11 (0xb), region = 128 }
 0x4d1   : > { %s4288_s22 = smov %s4285_s20 }
 0x4d2   :  { %2320 = vsyncpa [#allocation3], 1 }
 0x4d3   :  { %2322 = vsyncpa [#allocation3 + $0x1], 1 }
 0x4d4   :  { %2323 = vsyncpa [#allocation6], 1 }
 0x4d5   :  { %2324 = vsyncpa [#allocation9], 1 }
 0x4d6   :  { %2325 = vsyncpa [#allocation4], 1 }
 0x4d7   :  { %2327 = vsyncpa [#allocation4 + $0x1], 1 }

</bundles_post_ra>
